<compile_context>
chip_gen: v7x
topology: tpu7x:2x2x1
jax: 0.10.0
libtpu: 0.0.40
codegen_flags: <defaults>
</compile_context>

<pallas_src>
import math
from functools import partial

import jax
import jax.numpy as jnp
from jax.experimental import pallas as pl
from jax.experimental.pallas import tpu as pltpu

# ----------------------------------------------------------------------------
# Model hyper-parameters (small, consistent with the module's constructor).
# ----------------------------------------------------------------------------
HIDDEN_SIZE = 48
NUM_HEADS = 2
HEAD_SIZE = 32                      # projection dim = NUM_HEADS * HEAD_SIZE = 64
PROJ_DIM = NUM_HEADS * HEAD_SIZE
INTER_SIZE = HIDDEN_SIZE * 8 // 3   # SwiGLU intermediate = 128
RMS_EPS = 1e-6

BATCH = 2
SPATIAL = 8                         # H = W = 8  ->  S = 64
SEQ = SPATIAL * SPATIAL


def _rmsnorm(x, w):
    # x: (M, C) f32, w: (1, C) f32
    ms = jnp.mean(x * x, axis=-1, keepdims=True)
    return x * jax.lax.rsqrt(ms + RMS_EPS) * w


# ----------------------------------------------------------------------------
# Kernel: single invocation, all B*S tokens resident in VMEM.
# ----------------------------------------------------------------------------
def attention2d_kernel(x_ref, ln1_ref, wqkv_ref, wo_ref, ln2_ref, wgu_ref, wd_ref,
                       o_ref, *, batch, seq, num_heads, head_size, proj_dim,
                       inter_size):
    x = x_ref[...]                                            # (B*S, C) f32

    # ---- block 1: RMSNorm + fused QKV projection (M = B*S) ----------------
    h = _rmsnorm(x, ln1_ref[...]).astype(jnp.bfloat16)
    qkv = jnp.dot(h, wqkv_ref[...],
                  preferred_element_type=jnp.float32)         # (B*S, 3P) f32

    wo = wo_ref[...]                                          # (P, C) bf16

    # ---- multi-head self-attention, per (batch, head), Wo folded per head --
    attn_rows = []
    for b in range(batch):                                    # static unrolled
        rows = slice(b * seq, (b + 1) * seq)
        head_terms = []
        for hd in range(num_heads):                           # static unrolled
            q_sl = slice(hd * head_size, (hd + 1) * head_size)
            k_sl = slice(proj_dim + hd * head_size,
                         proj_dim + (hd + 1) * head_size)
            v_sl = slice(2 * proj_dim + hd * head_size,
                         2 * proj_dim + (hd + 1) * head_size)
            qh = qkv[rows, q_sl].astype(jnp.bfloat16)         # (S, HS), scale folded
            kh = qkv[rows, k_sl].astype(jnp.bfloat16)
            vh = qkv[rows, v_sl].astype(jnp.bfloat16)

            # scores without transposing kh: contract dim 1 of both operands
            s = jax.lax.dot_general(
                qh, kh, dimension_numbers=(((1,), (1,)), ((), ())),
                preferred_element_type=jnp.float32)           # (S, S) f32
            s = s - jnp.max(s, axis=-1, keepdims=True)
            p = jnp.exp(s)
            inv_l = pl.reciprocal(jnp.sum(p, axis=-1, keepdims=True),
                                  approx=True)                # (S, 1) f32

            ctx = jnp.dot(p.astype(jnp.bfloat16), vh,
                          preferred_element_type=jnp.float32)  # (S, HS) f32
            ctx = (ctx * inv_l).astype(jnp.bfloat16)

            # fold Wo per head instead of concatenating heads (f32 accumulation)
            head_terms.append(
                jnp.dot(ctx, wo[hd * head_size:(hd + 1) * head_size, :],
                        preferred_element_type=jnp.float32))   # (S, C) f32
        attn_rows.append(sum(head_terms))

    x = x + jnp.concatenate(attn_rows, axis=0)                # residual (B*S, C)

    # ---- block 2: RMSNorm + fused SwiGLU MLP + residual (M = B*S) ----------
    h2 = _rmsnorm(x, ln2_ref[...]).astype(jnp.bfloat16)
    gu = jnp.dot(h2, wgu_ref[...],
                 preferred_element_type=jnp.float32)          # (B*S, 2I) f32
    g = gu[:, :inter_size]
    u = gu[:, inter_size:]
    act = (g * jax.nn.sigmoid(g) * u).astype(jnp.bfloat16)
    mlp = jnp.dot(act, wd_ref[...], preferred_element_type=jnp.float32)

    o_ref[...] = x + mlp


# ----------------------------------------------------------------------------
# Parameter packing (done once, outside the hot path):
#   - fold 1/sqrt(head_size) into Wq
#   - concat [Wq*scale, Wk, Wv] and [Wg, Wu]
#   - cast all matmul weights to bf16
# ----------------------------------------------------------------------------
def pack_params(params):
    scale = 1.0 / math.sqrt(HEAD_SIZE)
    wqkv = jnp.concatenate(
        [params["wq"] * scale, params["wk"], params["wv"]], axis=1)
    wgu = jnp.concatenate([params["wg"], params["wu"]], axis=1)
    return {
        "ln1": params["ln1"].astype(jnp.float32),
        "ln2": params["ln2"].astype(jnp.float32),
        "wqkv": wqkv.astype(jnp.bfloat16),        # (C, 3P)
        "wo": params["wo"].astype(jnp.bfloat16),  # (P, C)
        "wgu": wgu.astype(jnp.bfloat16),          # (C, 2I)
        "wd": params["wd"].astype(jnp.bfloat16),  # (I, C)
    }


# ----------------------------------------------------------------------------
# Wrapper: layout plumbing (NCHW <-> (B*S, C)) + pallas_call.
# ----------------------------------------------------------------------------
def attention2d_forward(x_nchw, packed):
    B, C, H, W = x_nchw.shape
    S = H * W
    x_tok = (x_nchw.reshape(B, C, S).transpose(0, 2, 1)
             .reshape(B * S, C).astype(jnp.float32))          # (B*S, C)

    full = lambda shape: pl.BlockSpec(shape, lambda i: (0, 0))

    out_tok = pl.pallas_call(
        partial(attention2d_kernel, batch=B, seq=S, num_heads=NUM_HEADS,
                head_size=HEAD_SIZE, proj_dim=PROJ_DIM, inter_size=INTER_SIZE),
        out_shape=jax.ShapeDtypeStruct((B * S, C), jnp.float32),
        grid=(1,),
        in_specs=[
            full((B * S, C)),                 # x
            full((1, C)),                     # ln1 weight
            full((C, 3 * PROJ_DIM)),          # fused Wq|Wk|Wv (bf16, Wq pre-scaled)
            full((PROJ_DIM, C)),              # Wo (bf16)
            full((1, C)),                     # ln2 weight
            full((C, 2 * INTER_SIZE)),        # fused Wg|Wu (bf16)
            full((INTER_SIZE, C)),            # Wd (bf16)
        ],
        out_specs=full((B * S, C)),
        compiler_params=pltpu.CompilerParams(
            dimension_semantics=("arbitrary",)),
    )(x_tok, packed["ln1"], packed["wqkv"], packed["wo"],
      packed["ln2"], packed["wgu"], packed["wd"])

    return out_tok.reshape(B, S, C).transpose(0, 2, 1).reshape(B, C, H, W)


# ----------------------------------------------------------------------------
# Pure-JAX f32 reference (mirrors the PyTorch forward) for a correctness check.
# ----------------------------------------------------------------------------
def reference_forward(x_nchw, params):
    B, C, H, W = x_nchw.shape
    x = x_nchw.reshape(B, C, H * W).transpose(0, 2, 1)        # (B, S, C)

    def rms(v, w):
        ms = jnp.mean(v * v, axis=-1, keepdims=True)
        return v * jax.lax.rsqrt(ms + RMS_EPS) * w

    res = x
    h = rms(x, params["ln1"][0])
    q = h @ params["wq"]
    k = h @ params["wk"]
    v = h @ params["wv"]
    q = q.reshape(B, -1, NUM_HEADS, HEAD_SIZE).transpose(0, 2, 1, 3)
    k = k.reshape(B, -1, NUM_HEADS, HEAD_SIZE).transpose(0, 2, 1, 3)
    v = v.reshape(B, -1, NUM_HEADS, HEAD_SIZE).transpose(0, 2, 1, 3)
    s = jnp.einsum("bhqd,bhkd->bhqk", q, k) / math.sqrt(HEAD_SIZE)
    p = jax.nn.softmax(s, axis=-1)
    a = jnp.einsum("bhqk,bhkd->bhqd", p, v)
    a = a.transpose(0, 2, 1, 3).reshape(B, -1, PROJ_DIM)
    x = res + a @ params["wo"]

    res = x
    h2 = rms(x, params["ln2"][0])
    g = h2 @ params["wg"]
    u = h2 @ params["wu"]
    x = res + (jax.nn.silu(g) * u) @ params["wd"]

    return x.transpose(0, 2, 1).reshape(B, C, H, W)


# ----------------------------------------------------------------------------
# Main
# ----------------------------------------------------------------------------
if __name__ == "__main__":
    key = jax.random.PRNGKey(0)
    keys = jax.random.split(key, 8)

    def init(k, shape):
        return (0.02 * jax.random.normal(k, shape)).astype(jnp.float32)

    params = {
        "ln1": jnp.ones((1, HIDDEN_SIZE), jnp.float32),
        "ln2": jnp.ones((1, HIDDEN_SIZE), jnp.float32),
        "wq": init(keys[0], (HIDDEN_SIZE, PROJ_DIM)),
        "wk": init(keys[1], (HIDDEN_SIZE, PROJ_DIM)),
        "wv": init(keys[2], (HIDDEN_SIZE, PROJ_DIM)),
        "wo": init(keys[3], (PROJ_DIM, HIDDEN_SIZE)),
        "wg": init(keys[4], (HIDDEN_SIZE, INTER_SIZE)),
        "wu": init(keys[5], (HIDDEN_SIZE, INTER_SIZE)),
        "wd": init(keys[6], (INTER_SIZE, HIDDEN_SIZE)),
    }

    x = jax.random.normal(keys[7], (BATCH, HIDDEN_SIZE, SPATIAL, SPATIAL),
                          dtype=jnp.float32)

    packed = pack_params(params)            # one-time weight fusion + bf16 cast

    out = attention2d_forward(x, packed)
    out = jax.block_until_ready(out)

    ref = reference_forward(x, params)
    assert out.shape == x.shape
    # bf16 MXU operands + approx reciprocal => compare at loosened tolerance
    assert jnp.allclose(out, ref, atol=2e-2, rtol=2e-2), \
        f"max abs err = {jnp.max(jnp.abs(out - ref))}"

    print("KERNEL_OK")
</pallas_src>

<mosaic_0001>
module attributes {stable_mosaic.version = 11 : i64} {
  func.func @attention2d_kernel(%arg0: i32, %arg1: memref<128x48xf32, #tpu.memory_space<vmem>>, %arg2: memref<1x48xf32, #tpu.memory_space<vmem>>, %arg3: memref<48x192xbf16, #tpu.memory_space<vmem>>, %arg4: memref<64x48xbf16, #tpu.memory_space<vmem>>, %arg5: memref<1x48xf32, #tpu.memory_space<vmem>>, %arg6: memref<48x256xbf16, #tpu.memory_space<vmem>>, %arg7: memref<128x48xbf16, #tpu.memory_space<vmem>>, %arg8: memref<128x48xf32, #tpu.memory_space<vmem>>) attributes {dimension_semantics = [#tpu.dimension_semantics<arbitrary>], iteration_bounds = array<i64: 1>, scalar_prefetch = 0 : i64, scratch_operands = 0 : i64, tpu.core_type = #tpu.core_type<tc>, window_params = [{pipeline_mode = #tpu.pipeline_mode<synchronous>, transform_indices = @transform_0, window_bounds = array<i64: 128, 48>}, {pipeline_mode = #tpu.pipeline_mode<synchronous>, transform_indices = @transform_1, window_bounds = array<i64: 1, 48>}, {pipeline_mode = #tpu.pipeline_mode<synchronous>, transform_indices = @transform_2, window_bounds = array<i64: 48, 192>}, {pipeline_mode = #tpu.pipeline_mode<synchronous>, transform_indices = @transform_3, window_bounds = array<i64: 64, 48>}, {pipeline_mode = #tpu.pipeline_mode<synchronous>, transform_indices = @transform_4, window_bounds = array<i64: 1, 48>}, {pipeline_mode = #tpu.pipeline_mode<synchronous>, transform_indices = @transform_5, window_bounds = array<i64: 48, 256>}, {pipeline_mode = #tpu.pipeline_mode<synchronous>, transform_indices = @transform_6, window_bounds = array<i64: 128, 48>}, {pipeline_mode = #tpu.pipeline_mode<synchronous>, transform_indices = @transform_7, window_bounds = array<i64: 128, 48>}]} {
    %c0 = arith.constant 0 : index
    %c0_0 = arith.constant 0 : index
    %0 = vector.load %arg1[%c0, %c0_0] : memref<128x48xf32, #tpu.memory_space<vmem>>, vector<128x48xf32>
    %c0_1 = arith.constant 0 : index
    %c0_2 = arith.constant 0 : index
    %1 = vector.load %arg2[%c0_1, %c0_2] : memref<1x48xf32, #tpu.memory_space<vmem>>, vector<1x48xf32>
    %2 = arith.mulf %0, %0 : vector<128x48xf32>
    %cst = arith.constant dense<0.000000e+00> : vector<128xf32>
    %3 = vector.multi_reduction <add>, %2, %cst [1] : vector<128x48xf32> to vector<128xf32>
    %4 = vector.shape_cast %3 : vector<128xf32> to vector<128x1xf32>
    %cst_3 = arith.constant 4.800000e+01 : f32
    %5 = vector.broadcast %cst_3 : f32 to vector<128x1xf32>
    %6 = arith.divf %4, %5 : vector<128x1xf32>
    %cst_4 = arith.constant 9.99999997E-7 : f32
    %7 = vector.broadcast %cst_4 : f32 to vector<128x1xf32>
    %8 = arith.addf %6, %7 : vector<128x1xf32>
    %9 = math.rsqrt %8 : vector<128x1xf32>
    %10 = vector.broadcast %9 : vector<128x1xf32> to vector<128x48xf32>
    %11 = arith.mulf %0, %10 : vector<128x48xf32>
    %12 = vector.broadcast %1 : vector<1x48xf32> to vector<128x48xf32>
    %13 = arith.mulf %11, %12 : vector<128x48xf32>
    %14 = arith.truncf %13 : vector<128x48xf32> to vector<128x48xbf16>
    %c0_5 = arith.constant 0 : index
    %c0_6 = arith.constant 0 : index
    %15 = vector.load %arg3[%c0_5, %c0_6] : memref<48x192xbf16, #tpu.memory_space<vmem>>, vector<48x192xbf16>
    %cst_7 = arith.constant dense<0.000000e+00> : vector<128x192xf32>
    %16 = tpu.matmul %14, %15, %cst_7 {dimension_numbers = #tpu.dot_dimension_numbers<[1], [0], [0], [1], [0, 0, 1, 1], [], []>} : vector<128x48xbf16>, vector<48x192xbf16>, vector<128x192xf32> -> vector<128x192xf32>
    %c0_8 = arith.constant 0 : index
    %c0_9 = arith.constant 0 : index
    %17 = vector.load %arg4[%c0_8, %c0_9] : memref<64x48xbf16, #tpu.memory_space<vmem>>, vector<64x48xbf16>
    %18 = vector.extract_strided_slice %16 {offsets = [0, 0], sizes = [64, 32], strides = [1, 1]} : vector<128x192xf32> to vector<64x32xf32>
    %19 = arith.truncf %18 : vector<64x32xf32> to vector<64x32xbf16>
    %20 = vector.extract_strided_slice %16 {offsets = [0, 64], sizes = [64, 32], strides = [1, 1]} : vector<128x192xf32> to vector<64x32xf32>
    %21 = arith.truncf %20 : vector<64x32xf32> to vector<64x32xbf16>
    %22 = vector.extract_strided_slice %16 {offsets = [0, 128], sizes = [64, 32], strides = [1, 1]} : vector<128x192xf32> to vector<64x32xf32>
    %23 = arith.truncf %22 : vector<64x32xf32> to vector<64x32xbf16>
    %cst_10 = arith.constant dense<0.000000e+00> : vector<64x64xf32>
    %24 = tpu.matmul %19, %21, %cst_10 {dimension_numbers = #tpu.dot_dimension_numbers<[1], [1], [0], [0], [0, 0, 1, 0], [], []>} : vector<64x32xbf16>, vector<64x32xbf16>, vector<64x64xf32> -> vector<64x64xf32>
    %cst_11 = arith.constant dense<0xFF800000> : vector<64xf32>
    %25 = vector.multi_reduction <maximumf>, %24, %cst_11 [1] : vector<64x64xf32> to vector<64xf32>
    %26 = vector.shape_cast %25 : vector<64xf32> to vector<64x1xf32>
    %27 = vector.broadcast %26 : vector<64x1xf32> to vector<64x64xf32>
    %28 = arith.subf %24, %27 : vector<64x64xf32>
    %29 = math.exp %28 : vector<64x64xf32>
    %cst_12 = arith.constant dense<0.000000e+00> : vector<64xf32>
    %30 = vector.multi_reduction <add>, %29, %cst_12 [1] : vector<64x64xf32> to vector<64xf32>
    %31 = vector.shape_cast %30 : vector<64xf32> to vector<64x1xf32>
    %32 = tpu.reciprocal %31 {approx = true} : vector<64x1xf32> -> vector<64x1xf32>
    %33 = arith.truncf %29 : vector<64x64xf32> to vector<64x64xbf16>
    %cst_13 = arith.constant dense<0.000000e+00> : vector<64x32xf32>
    %34 = tpu.matmul %33, %23, %cst_13 {dimension_numbers = #tpu.dot_dimension_numbers<[1], [0], [0], [1], [0, 0, 1, 1], [], []>} : vector<64x64xbf16>, vector<64x32xbf16>, vector<64x32xf32> -> vector<64x32xf32>
    %35 = vector.broadcast %32 : vector<64x1xf32> to vector<64x32xf32>
    %36 = arith.mulf %34, %35 : vector<64x32xf32>
    %37 = arith.truncf %36 : vector<64x32xf32> to vector<64x32xbf16>
    %38 = vector.extract_strided_slice %17 {offsets = [0, 0], sizes = [32, 48], strides = [1, 1]} : vector<64x48xbf16> to vector<32x48xbf16>
    %cst_14 = arith.constant dense<0.000000e+00> : vector<64x48xf32>
    %39 = tpu.matmul %37, %38, %cst_14 {dimension_numbers = #tpu.dot_dimension_numbers<[1], [0], [0], [1], [0, 0, 1, 1], [], []>} : vector<64x32xbf16>, vector<32x48xbf16>, vector<64x48xf32> -> vector<64x48xf32>
    %40 = vector.extract_strided_slice %16 {offsets = [0, 32], sizes = [64, 32], strides = [1, 1]} : vector<128x192xf32> to vector<64x32xf32>
    %41 = arith.truncf %40 : vector<64x32xf32> to vector<64x32xbf16>
    %42 = vector.extract_strided_slice %16 {offsets = [0, 96], sizes = [64, 32], strides = [1, 1]} : vector<128x192xf32> to vector<64x32xf32>
    %43 = arith.truncf %42 : vector<64x32xf32> to vector<64x32xbf16>
    %44 = vector.extract_strided_slice %16 {offsets = [0, 160], sizes = [64, 32], strides = [1, 1]} : vector<128x192xf32> to vector<64x32xf32>
    %45 = arith.truncf %44 : vector<64x32xf32> to vector<64x32xbf16>
    %cst_15 = arith.constant dense<0.000000e+00> : vector<64x64xf32>
    %46 = tpu.matmul %41, %43, %cst_15 {dimension_numbers = #tpu.dot_dimension_numbers<[1], [1], [0], [0], [0, 0, 1, 0], [], []>} : vector<64x32xbf16>, vector<64x32xbf16>, vector<64x64xf32> -> vector<64x64xf32>
    %cst_16 = arith.constant dense<0xFF800000> : vector<64xf32>
    %47 = vector.multi_reduction <maximumf>, %46, %cst_16 [1] : vector<64x64xf32> to vector<64xf32>
    %48 = vector.shape_cast %47 : vector<64xf32> to vector<64x1xf32>
    %49 = vector.broadcast %48 : vector<64x1xf32> to vector<64x64xf32>
    %50 = arith.subf %46, %49 : vector<64x64xf32>
    %51 = math.exp %50 : vector<64x64xf32>
    %cst_17 = arith.constant dense<0.000000e+00> : vector<64xf32>
    %52 = vector.multi_reduction <add>, %51, %cst_17 [1] : vector<64x64xf32> to vector<64xf32>
    %53 = vector.shape_cast %52 : vector<64xf32> to vector<64x1xf32>
    %54 = tpu.reciprocal %53 {approx = true} : vector<64x1xf32> -> vector<64x1xf32>
    %55 = arith.truncf %51 : vector<64x64xf32> to vector<64x64xbf16>
    %cst_18 = arith.constant dense<0.000000e+00> : vector<64x32xf32>
    %56 = tpu.matmul %55, %45, %cst_18 {dimension_numbers = #tpu.dot_dimension_numbers<[1], [0], [0], [1], [0, 0, 1, 1], [], []>} : vector<64x64xbf16>, vector<64x32xbf16>, vector<64x32xf32> -> vector<64x32xf32>
    %57 = vector.broadcast %54 : vector<64x1xf32> to vector<64x32xf32>
    %58 = arith.mulf %56, %57 : vector<64x32xf32>
    %59 = arith.truncf %58 : vector<64x32xf32> to vector<64x32xbf16>
    %60 = vector.extract_strided_slice %17 {offsets = [32, 0], sizes = [32, 48], strides = [1, 1]} : vector<64x48xbf16> to vector<32x48xbf16>
    %cst_19 = arith.constant dense<0.000000e+00> : vector<64x48xf32>
    %61 = tpu.matmul %59, %60, %cst_19 {dimension_numbers = #tpu.dot_dimension_numbers<[1], [0], [0], [1], [0, 0, 1, 1], [], []>} : vector<64x32xbf16>, vector<32x48xbf16>, vector<64x48xf32> -> vector<64x48xf32>
    %cst_20 = arith.constant 0.000000e+00 : f32
    %62 = vector.broadcast %cst_20 : f32 to vector<64x48xf32>
    %63 = arith.addf %62, %39 : vector<64x48xf32>
    %64 = arith.addf %63, %61 : vector<64x48xf32>
    %65 = vector.extract_strided_slice %16 {offsets = [64, 0], sizes = [64, 32], strides = [1, 1]} : vector<128x192xf32> to vector<64x32xf32>
    %66 = arith.truncf %65 : vector<64x32xf32> to vector<64x32xbf16>
    %67 = vector.extract_strided_slice %16 {offsets = [64, 64], sizes = [64, 32], strides = [1, 1]} : vector<128x192xf32> to vector<64x32xf32>
    %68 = arith.truncf %67 : vector<64x32xf32> to vector<64x32xbf16>
    %69 = vector.extract_strided_slice %16 {offsets = [64, 128], sizes = [64, 32], strides = [1, 1]} : vector<128x192xf32> to vector<64x32xf32>
    %70 = arith.truncf %69 : vector<64x32xf32> to vector<64x32xbf16>
    %cst_21 = arith.constant dense<0.000000e+00> : vector<64x64xf32>
    %71 = tpu.matmul %66, %68, %cst_21 {dimension_numbers = #tpu.dot_dimension_numbers<[1], [1], [0], [0], [0, 0, 1, 0], [], []>} : vector<64x32xbf16>, vector<64x32xbf16>, vector<64x64xf32> -> vector<64x64xf32>
    %cst_22 = arith.constant dense<0xFF800000> : vector<64xf32>
    %72 = vector.multi_reduction <maximumf>, %71, %cst_22 [1] : vector<64x64xf32> to vector<64xf32>
    %73 = vector.shape_cast %72 : vector<64xf32> to vector<64x1xf32>
    %74 = vector.broadcast %73 : vector<64x1xf32> to vector<64x64xf32>
    %75 = arith.subf %71, %74 : vector<64x64xf32>
    %76 = math.exp %75 : vector<64x64xf32>
    %cst_23 = arith.constant dense<0.000000e+00> : vector<64xf32>
    %77 = vector.multi_reduction <add>, %76, %cst_23 [1] : vector<64x64xf32> to vector<64xf32>
    %78 = vector.shape_cast %77 : vector<64xf32> to vector<64x1xf32>
    %79 = tpu.reciprocal %78 {approx = true} : vector<64x1xf32> -> vector<64x1xf32>
    %80 = arith.truncf %76 : vector<64x64xf32> to vector<64x64xbf16>
    %cst_24 = arith.constant dense<0.000000e+00> : vector<64x32xf32>
    %81 = tpu.matmul %80, %70, %cst_24 {dimension_numbers = #tpu.dot_dimension_numbers<[1], [0], [0], [1], [0, 0, 1, 1], [], []>} : vector<64x64xbf16>, vector<64x32xbf16>, vector<64x32xf32> -> vector<64x32xf32>
    %82 = vector.broadcast %79 : vector<64x1xf32> to vector<64x32xf32>
    %83 = arith.mulf %81, %82 : vector<64x32xf32>
    %84 = arith.truncf %83 : vector<64x32xf32> to vector<64x32xbf16>
    %85 = vector.extract_strided_slice %17 {offsets = [0, 0], sizes = [32, 48], strides = [1, 1]} : vector<64x48xbf16> to vector<32x48xbf16>
    %cst_25 = arith.constant dense<0.000000e+00> : vector<64x48xf32>
    %86 = tpu.matmul %84, %85, %cst_25 {dimension_numbers = #tpu.dot_dimension_numbers<[1], [0], [0], [1], [0, 0, 1, 1], [], []>} : vector<64x32xbf16>, vector<32x48xbf16>, vector<64x48xf32> -> vector<64x48xf32>
    %87 = vector.extract_strided_slice %16 {offsets = [64, 32], sizes = [64, 32], strides = [1, 1]} : vector<128x192xf32> to vector<64x32xf32>
    %88 = arith.truncf %87 : vector<64x32xf32> to vector<64x32xbf16>
    %89 = vector.extract_strided_slice %16 {offsets = [64, 96], sizes = [64, 32], strides = [1, 1]} : vector<128x192xf32> to vector<64x32xf32>
    %90 = arith.truncf %89 : vector<64x32xf32> to vector<64x32xbf16>
    %91 = vector.extract_strided_slice %16 {offsets = [64, 160], sizes = [64, 32], strides = [1, 1]} : vector<128x192xf32> to vector<64x32xf32>
    %92 = arith.truncf %91 : vector<64x32xf32> to vector<64x32xbf16>
    %cst_26 = arith.constant dense<0.000000e+00> : vector<64x64xf32>
    %93 = tpu.matmul %88, %90, %cst_26 {dimension_numbers = #tpu.dot_dimension_numbers<[1], [1], [0], [0], [0, 0, 1, 0], [], []>} : vector<64x32xbf16>, vector<64x32xbf16>, vector<64x64xf32> -> vector<64x64xf32>
    %cst_27 = arith.constant dense<0xFF800000> : vector<64xf32>
    %94 = vector.multi_reduction <maximumf>, %93, %cst_27 [1] : vector<64x64xf32> to vector<64xf32>
    %95 = vector.shape_cast %94 : vector<64xf32> to vector<64x1xf32>
    %96 = vector.broadcast %95 : vector<64x1xf32> to vector<64x64xf32>
    %97 = arith.subf %93, %96 : vector<64x64xf32>
    %98 = math.exp %97 : vector<64x64xf32>
    %cst_28 = arith.constant dense<0.000000e+00> : vector<64xf32>
    %99 = vector.multi_reduction <add>, %98, %cst_28 [1] : vector<64x64xf32> to vector<64xf32>
    %100 = vector.shape_cast %99 : vector<64xf32> to vector<64x1xf32>
    %101 = tpu.reciprocal %100 {approx = true} : vector<64x1xf32> -> vector<64x1xf32>
    %102 = arith.truncf %98 : vector<64x64xf32> to vector<64x64xbf16>
    %cst_29 = arith.constant dense<0.000000e+00> : vector<64x32xf32>
    %103 = tpu.matmul %102, %92, %cst_29 {dimension_numbers = #tpu.dot_dimension_numbers<[1], [0], [0], [1], [0, 0, 1, 1], [], []>} : vector<64x64xbf16>, vector<64x32xbf16>, vector<64x32xf32> -> vector<64x32xf32>
    %104 = vector.broadcast %101 : vector<64x1xf32> to vector<64x32xf32>
    %105 = arith.mulf %103, %104 : vector<64x32xf32>
    %106 = arith.truncf %105 : vector<64x32xf32> to vector<64x32xbf16>
    %107 = vector.extract_strided_slice %17 {offsets = [32, 0], sizes = [32, 48], strides = [1, 1]} : vector<64x48xbf16> to vector<32x48xbf16>
    %cst_30 = arith.constant dense<0.000000e+00> : vector<64x48xf32>
    %108 = tpu.matmul %106, %107, %cst_30 {dimension_numbers = #tpu.dot_dimension_numbers<[1], [0], [0], [1], [0, 0, 1, 1], [], []>} : vector<64x32xbf16>, vector<32x48xbf16>, vector<64x48xf32> -> vector<64x48xf32>
    %cst_31 = arith.constant 0.000000e+00 : f32
    %109 = vector.broadcast %cst_31 : f32 to vector<64x48xf32>
    %110 = arith.addf %109, %86 : vector<64x48xf32>
    %111 = arith.addf %110, %108 : vector<64x48xf32>
    %112 = tpu.concatenate %64, %111 in 0 : vector<64x48xf32>, vector<64x48xf32> -> vector<128x48xf32>
    %113 = arith.addf %0, %112 : vector<128x48xf32>
    %c0_32 = arith.constant 0 : index
    %c0_33 = arith.constant 0 : index
    %114 = vector.load %arg5[%c0_32, %c0_33] : memref<1x48xf32, #tpu.memory_space<vmem>>, vector<1x48xf32>
    %115 = arith.mulf %113, %113 : vector<128x48xf32>
    %cst_34 = arith.constant dense<0.000000e+00> : vector<128xf32>
    %116 = vector.multi_reduction <add>, %115, %cst_34 [1] : vector<128x48xf32> to vector<128xf32>
    %117 = vector.shape_cast %116 : vector<128xf32> to vector<128x1xf32>
    %cst_35 = arith.constant 4.800000e+01 : f32
    %118 = vector.broadcast %cst_35 : f32 to vector<128x1xf32>
    %119 = arith.divf %117, %118 : vector<128x1xf32>
    %cst_36 = arith.constant 9.99999997E-7 : f32
    %120 = vector.broadcast %cst_36 : f32 to vector<128x1xf32>
    %121 = arith.addf %119, %120 : vector<128x1xf32>
    %122 = math.rsqrt %121 : vector<128x1xf32>
    %123 = vector.broadcast %122 : vector<128x1xf32> to vector<128x48xf32>
    %124 = arith.mulf %113, %123 : vector<128x48xf32>
    %125 = vector.broadcast %114 : vector<1x48xf32> to vector<128x48xf32>
    %126 = arith.mulf %124, %125 : vector<128x48xf32>
    %127 = arith.truncf %126 : vector<128x48xf32> to vector<128x48xbf16>
    %c0_37 = arith.constant 0 : index
    %c0_38 = arith.constant 0 : index
    %128 = vector.load %arg6[%c0_37, %c0_38] : memref<48x256xbf16, #tpu.memory_space<vmem>>, vector<48x256xbf16>
    %cst_39 = arith.constant dense<0.000000e+00> : vector<128x256xf32>
    %129 = tpu.matmul %127, %128, %cst_39 {dimension_numbers = #tpu.dot_dimension_numbers<[1], [0], [0], [1], [0, 0, 1, 1], [], []>} : vector<128x48xbf16>, vector<48x256xbf16>, vector<128x256xf32> -> vector<128x256xf32>
    %130 = vector.extract_strided_slice %129 {offsets = [0, 0], sizes = [128, 128], strides = [1, 1]} : vector<128x256xf32> to vector<128x128xf32>
    %131 = vector.extract_strided_slice %129 {offsets = [0, 128], sizes = [128, 128], strides = [1, 1]} : vector<128x256xf32> to vector<128x128xf32>
    %132 = arith.negf %130 : vector<128x128xf32>
    %133 = math.exp %132 : vector<128x128xf32>
    %cst_40 = arith.constant 1.000000e+00 : f32
    %134 = vector.broadcast %cst_40 : f32 to vector<128x128xf32>
    %135 = arith.addf %134, %133 : vector<128x128xf32>
    %136 = arith.divf %134, %135 : vector<128x128xf32>
    %137 = arith.mulf %130, %136 : vector<128x128xf32>
    %138 = arith.mulf %137, %131 : vector<128x128xf32>
    %139 = arith.truncf %138 : vector<128x128xf32> to vector<128x128xbf16>
    %c0_41 = arith.constant 0 : index
    %c0_42 = arith.constant 0 : index
    %140 = vector.load %arg7[%c0_41, %c0_42] : memref<128x48xbf16, #tpu.memory_space<vmem>>, vector<128x48xbf16>
    %cst_43 = arith.constant dense<0.000000e+00> : vector<128x48xf32>
    %141 = tpu.matmul %139, %140, %cst_43 {dimension_numbers = #tpu.dot_dimension_numbers<[1], [0], [0], [1], [0, 0, 1, 1], [], []>} : vector<128x128xbf16>, vector<128x48xbf16>, vector<128x48xf32> -> vector<128x48xf32>
    %142 = arith.addf %113, %141 : vector<128x48xf32>
    %c0_44 = arith.constant 0 : index
    %c0_45 = arith.constant 0 : index
    %143 = vector.load %arg8[%c0_44, %c0_45] : memref<128x48xf32, #tpu.memory_space<vmem>>, vector<128x48xf32>
    tpu.vector_store %arg8[%c0_44, %c0_45], %142 {strides = array<i32>} : memref<128x48xf32, #tpu.memory_space<vmem>>, vector<128x48xf32>,
    return
  }
  func.func @transform_0(%arg0: i32) -> (i32, i32) {
    %c0_i32 = arith.constant 0 : i32
    %c0_i32_0 = arith.constant 0 : i32
    %c0_i32_1 = arith.constant 0 : i32
    return %c0_i32, %c0_i32_0 : i32, i32
  }
  func.func @transform_1(%arg0: i32) -> (i32, i32) {
    %c0_i32 = arith.constant 0 : i32
    %c0_i32_0 = arith.constant 0 : i32
    %c0_i32_1 = arith.constant 0 : i32
    return %c0_i32, %c0_i32_0 : i32, i32
  }
  func.func @transform_2(%arg0: i32) -> (i32, i32) {
    %c0_i32 = arith.constant 0 : i32
    %c0_i32_0 = arith.constant 0 : i32
    %c0_i32_1 = arith.constant 0 : i32
    return %c0_i32, %c0_i32_0 : i32, i32
  }
  func.func @transform_3(%arg0: i32) -> (i32, i32) {
    %c0_i32 = arith.constant 0 : i32
    %c0_i32_0 = arith.constant 0 : i32
    %c0_i32_1 = arith.constant 0 : i32
    return %c0_i32, %c0_i32_0 : i32, i32
  }
  func.func @transform_4(%arg0: i32) -> (i32, i32) {
    %c0_i32 = arith.constant 0 : i32
    %c0_i32_0 = arith.constant 0 : i32
    %c0_i32_1 = arith.constant 0 : i32
    return %c0_i32, %c0_i32_0 : i32, i32
  }
  func.func @transform_5(%arg0: i32) -> (i32, i32) {
    %c0_i32 = arith.constant 0 : i32
    %c0_i32_0 = arith.constant 0 : i32
    %c0_i32_1 = arith.constant 0 : i32
    return %c0_i32, %c0_i32_0 : i32, i32
  }
  func.func @transform_6(%arg0: i32) -> (i32, i32) {
    %c0_i32 = arith.constant 0 : i32
    %c0_i32_0 = arith.constant 0 : i32
    %c0_i32_1 = arith.constant 0 : i32
    return %c0_i32, %c0_i32_0 : i32, i32
  }
  func.func @transform_7(%arg0: i32) -> (i32, i32) {
    %c0_i32 = arith.constant 0 : i32
    %c0_i32_0 = arith.constant 0 : i32
    %c0_i32_1 = arith.constant 0 : i32
    return %c0_i32, %c0_i32_0 : i32, i32
  }
}

</mosaic_0001>

<bundles_post_ra>
// kernel: tpu_custom_call.1
= control target key start
LH: loop header
LB: loop body
LE: loop exit
PB: predicated region body
PF: predicated region fallthrough
CT: control target
= control target key end

     0   :  { %vm60_vm0 = vcmask 392192   ;;  %v3308_v53 = vmov 0   ;;  %vm405_vm1 = vcmask 261120   ;;  %s3310_s23 = smov 32   ;;  %s3311_s24 = smov 96   ;;  %vm495_vm2 = vcmask 523264   ;;  %s4519_s0 = inlined_call_operand.vmem [shape: f32[128,48], index: 0, kind: input, shape index: {}]   ;;  %s4520_s2 = inlined_call_operand.vmem [shape: bf16[48,192], index: 2, kind: input, shape index: {}]   ;;  %s4521_s1 = inlined_call_operand.vmem [shape: f32[1,48], index: 1, kind: input, shape index: {}]   ;;  %s4522_s3 = inlined_call_operand.vmem [shape: bf16[64,48], index: 3, kind: input, shape index: {}]   ;;  %s4523_s5 = inlined_call_operand.vmem [shape: bf16[48,256], index: 5, kind: input, shape index: {}]   ;;  %s4524_s4 = inlined_call_operand.vmem [shape: f32[1,48], index: 4, kind: input, shape index: {}]   ;;  %s4525_s6 = inlined_call_operand.vmem [shape: bf16[128,48], index: 6, kind: input, shape index: {}]   ;;  %s4526_s7 = inlined_call_operand.vmem [shape: f32[128,48], index: 7, kind: output, shape index: {}]  }
   0x1   :  { %v3355_v0 = vld [vmem:[%s4519_s0] sm:$0xff]  ;;  %v3360_v1 = vld [vmem:[%s4519_s0 + $0x10] sm:$0xff]  ;;  %v3365_v2 = vld [vmem:[%s4519_s0 + $0x8] sm:$0xff]  ;;  %296 = vmatprep.mubr.bf16.mxu0 %v3308_v53 }
   0x2   :  { %v44_v3 = vmul.f32 %v3355_v0, %v3355_v0  ;;  %v46_v4 = vmul.f32 %v3360_v1, %v3360_v1  ;;  %v45_v5 = vmul.f32 %v3365_v2, %v3365_v2  ;;  %v3376_v6 = vld [vmem:[%s4519_s0 + $0x18] sm:$0xff]  ;;  %v3383_v8 = vld [vmem:[%s4519_s0 + $0x28] sm:$0xff]  ;;  %v3388_v9 = vld [vmem:[%s4519_s0 + $0x20] sm:$0xff] }
   0x3   :  { %v47_v7 = vmul.f32 %v3376_v6, %v3376_v6  ;;  %v49_v14 = vmul.f32 %v3383_v8, %v3383_v8  ;;  %v48_v15 = vmul.f32 %v3388_v9, %v3388_v9  ;;  %v3401_v16 = vld [vmem:[%s4519_s0 + $0x38] sm:$0xff]  ;;  %v3406_v17 = vld [vmem:[%s4519_s0 + $0x30] sm:$0xff]  ;;  %v3417_v22 = vld [vmem:[%s4519_s0 + $0x48] sm:$0xff] }
   0x4   :  { %v61_v10 = vsel %vm60_vm0, %v44_v3, 0.0  ;;  %v67_v11 = vsel %vm60_vm0, %v46_v4, 0.0  ;;  %v64_v12 = vsel %vm60_vm0, %v45_v5, 0.0  ;;  %v51_v20 = vmul.f32 %v3401_v16, %v3401_v16  ;;  %v3422_v23 = vld [vmem:[%s4519_s0 + $0x40] sm:$0xff]  ;;  %v3433_v28 = vld [vmem:[%s4519_s0 + $0x58] sm:$0xff]  ;;  %v3438_v29 = vld [vmem:[%s4519_s0 + $0x50] sm:$0xff] }
   0x5   :  { %62 = vadd.xlane.f32.xlu0 %v61_v10  ;;  %68 = vadd.xlane.f32.xlu1 %v67_v11  ;;  %v70_v13 = vsel %vm60_vm0, %v47_v7, 0.0  ;;  %v76_v18 = vsel %vm60_vm0, %v49_v14, 0.0  ;;  %v73_v19 = vsel %vm60_vm0, %v48_v15, 0.0  ;;  %v50_v21 = vmul.f32 %v3406_v17, %v3406_v17  ;;  %v3449_v34 = vld [vmem:[%s4519_s0 + $0x68] sm:$0xff]  ;;  %v3454_v35 = vld [vmem:[%s4519_s0 + $0x60] sm:$0xff]  ;;  %v3465_v40 = vld [vmem:[%s4519_s0 + $0x78] sm:$0xff] }
   0x6   :  { %v82_v24 = vsel %vm60_vm0, %v51_v20, 0.0  ;;  %v53_v26 = vmul.f32 %v3417_v22, %v3417_v22  ;;  %v52_v27 = vmul.f32 %v3422_v23, %v3422_v23  ;;  %v55_v32 = vmul.f32 %v3433_v28, %v3433_v28  ;;  %v3470_v41 = vld [vmem:[%s4519_s0 + $0x70] sm:$0xff]  ;;  %v3006_v46 = vld [vmem:[%s4520_s2 + $0x4] ss:$8 sps:$4 sm:$0xff]   ;;  %v3008_v49 = vld [vmem:[%s4520_s2] ss:$8 sps:$4 sm:$0xff]  }
   0x7   :  { %v79_v25 = vsel %vm60_vm0, %v50_v21, 0.0  ;;  %v54_v33 = vmul.f32 %v3438_v29, %v3438_v29  ;;  %v57_v38 = vmul.f32 %v3449_v34, %v3449_v34  ;;  %v56_v39 = vmul.f32 %v3454_v35, %v3454_v35  ;;  %264 = vmatprep.subr.bf16.mxu0 %v3006_v46  ;;  %v3009_v50 = vld [vmem:[%s4520_s2 + $0x14] ss:$8 sps:$4 sm:$0xff]   ;;  %v3011_v51 = vld [vmem:[%s4520_s2 + $0x10] ss:$8 sps:$4 sm:$0xff]  }
   0x8   :  { %v88_v30 = vsel %vm60_vm0, %v53_v26, 0.0  ;;  %v85_v31 = vsel %vm60_vm0, %v52_v27, 0.0  ;;  %v94_v36 = vsel %vm60_vm0, %v55_v32, 0.0  ;;  %v59_v44 = vmul.f32 %v3465_v40, %v3465_v40  ;;  %265 = vmatpush1.bf16.msra.mxu0 %v3008_v49  ;;  %v3012_v52 = vld [vmem:[%s4520_s2 + $0x24] ss:$8 sps:$4 sm:$0xff]  }
   0x9   :  { %65 = vadd.xlane.f32.xlu0 %v64_v12  ;;  %71 = vadd.xlane.f32.xlu1 %v70_v13  ;;  %v91_v37 = vsel %vm60_vm0, %v54_v33, 0.0  ;;  %v100_v42 = vsel %vm60_vm0, %v57_v38, 0.0  ;;  %v97_v43 = vsel %vm60_vm0, %v56_v39, 0.0  ;;  %v58_v45 = vmul.f32 %v3470_v41, %v3470_v41  ;;  %v3014_v54 = vld [vmem:[%s4520_s2 + $0x20] ss:$8 sps:$4 sm:$0xff]  }
   0xa   :  { %v106_v47 = vsel %vm60_vm0, %v59_v44, 0.0  ;;  %266 = vmatprep.subr.bf16.mxu0 %v3009_v50  ;;  %v3503_v26 = vld [vmem:[%s4521_s1] ss:$0 sm:$0xff]  ;;  %s3309_s1 = smov 64  }
   0xb   :  { %v103_v48 = vsel %vm60_vm0, %v58_v45, 0.0 }
   0xc   :  { %267 = vmatpush1.bf16.msra.mxu0 %v3011_v51 }
   0xd   :  { %77 = vadd.xlane.f32.xlu1 %v76_v18  ;;  %74 = vadd.xlane.f32.xlu0 %v73_v19 }
   0xe   :  { %268 = vmatprep.subr.bf16.mxu0 %v3012_v52 }
  0x10   :  { %269 = vmatpush1.bf16.msra.mxu0 %v3014_v54 }
  0x11   :  { %83 = vadd.xlane.f32.xlu1 %v82_v24  ;;  %80 = vadd.xlane.f32.xlu0 %v79_v25 }
  0x15   :  { %89 = vadd.xlane.f32.xlu1 %v88_v30  ;;  %86 = vadd.xlane.f32.xlu0 %v85_v31 }
  0x19   :  { %95 = vadd.xlane.f32.xlu1 %v94_v36  ;;  %92 = vadd.xlane.f32.xlu0 %v91_v37 }
  0x1d   :  { %101 = vadd.xlane.f32.xlu1 %v100_v42  ;;  %98 = vadd.xlane.f32.xlu0 %v97_v43 }
  0x21   :  { %107 = vadd.xlane.f32.xlu1 %v106_v47  ;;  %104 = vadd.xlane.f32.xlu0 %v103_v48 }
  0x92   :  { %v63_v55 = vpop.xlane.xlu0 %62  ;;  %v69_v56 = vpop.xlane.xlu1 %68 }
  0x93   :  { %v110_v57 = vmul.f32 0.020833334, %v63_v55  ;;  %v112_v58 = vmul.f32 0.020833334, %v69_v56 }
  0x95   :  { %v126_v59 = vadd.f32 1e-06, %v110_v57  ;;  %v128_v3 = vadd.f32 1e-06, %v112_v58 }
  0x96   :  { %v66_v60 = vpop.xlane.xlu0 %65  ;;  %v72_v61 = vpop.xlane.xlu1 %71 }
  0x97   :  { %3036 = vrsqrt.f32 %v126_v59  ;;  %v111_v62 = vmul.f32 0.020833334, %v66_v60  ;;  %v113_v63 = vmul.f32 0.020833334, %v72_v61 }
  0x99   :  { %v127_v4 = vadd.f32 1e-06, %v111_v62  ;;  %v129_v5 = vadd.f32 1e-06, %v113_v63 }
  0x9a   :  { %v78_v7 = vpop.xlane.xlu1 %77  ;;  %v75_v10 = vpop.xlane.xlu0 %74 }
  0x9b   :  { %3038 = vrsqrt.f32 %v127_v4  ;;  %v115_v11 = vmul.f32 0.020833334, %v78_v7  ;;  %v114_v12 = vmul.f32 0.020833334, %v75_v10 }
  0x9c   :  { %3040 = vrsqrt.f32 %v128_v3 }
  0x9d   :  { %3042 = vrsqrt.f32 %v129_v5  ;;  %v131_v13 = vadd.f32 1e-06, %v115_v11  ;;  %v130_v15 = vadd.f32 1e-06, %v114_v12 }
  0x9e   :  { %v84_v14 = vpop.xlane.xlu1 %83  ;;  %v81_v18 = vpop.xlane.xlu0 %80 }
  0x9f   :  { %v117_v20 = vmul.f32 0.020833334, %v84_v14  ;;  %3044 = vrsqrt.f32 %v131_v13  ;;  %v116_v21 = vmul.f32 0.020833334, %v81_v18 }
  0xa0   :  { %3046 = vrsqrt.f32 %v130_v15 }
  0xa1   :  { %v3037_v19 = vpop.eup %3036  ;;  %v133_v27 = vadd.f32 1e-06, %v117_v20  ;;  %v132_v33 = vadd.f32 1e-06, %v116_v21 }
  0xa2   :  { %v158_v24 = vmul.f32 %v3037_v19, %v3355_v0  ;;  %v90_v36 = vpop.xlane.xlu1 %89  ;;  %v87_v39 = vpop.xlane.xlu0 %86 }
  0xa3   :  { %3048 = vrsqrt.f32 %v133_v27  ;;  %v119_v44 = vmul.f32 0.020833334, %v90_v36  ;;  %v118_v45 = vmul.f32 0.020833334, %v87_v39 }
  0xa4   :  { %v180_v37 = vmul.f32 %v3503_v26, %v158_v24  ;;  %3050 = vrsqrt.f32 %v132_v33 }
  0xa5   :  { %v3039_v25 = vpop.eup %3038  ;;  %v135_v49 = vadd.f32 1e-06, %v119_v44  ;;  %v134_v50 = vadd.f32 1e-06, %v118_v45 }
  0xa6   :  { %v3041_v30 = vpop.eup %3040  ;;  %v159_v31 = vmul.f32 %v3039_v25, %v3365_v2  ;;  %v96_v51 = vpop.xlane.xlu1 %95 }
  0xa7   :  { %v3043_v32 = vpop.eup %3042  ;;  %v160_v42 = vmul.f32 %v3041_v30, %v3360_v1  ;;  %v93_v52 = vpop.xlane.xlu0 %92  ;;  %3052 = vrsqrt.f32 %v135_v49  ;;  %v121_v55 = vmul.f32 0.020833334, %v96_v51 }
  0xa8   :  { %v181_v38 = vmul.f32 %v3503_v26, %v159_v31  ;;  %v161_v43 = vmul.f32 %v3043_v32, %v3376_v6  ;;  %3054 = vrsqrt.f32 %v134_v50  ;;  %v120_v57 = vmul.f32 0.020833334, %v93_v52 }
  0xa9   :  { %v3045_v46 = vpop.eup %3044  ;;  %v182_v47 = vmul.f32 %v3503_v26, %v160_v42  ;;  %v137_v61 = vadd.f32 1e-06, %v121_v55 }
  0xaa   :  { %v196_v0 = vpack.c.bf16 %v181_v38, %v180_v37  ;;  %v3047_v2 = vpop.eup %3046  ;;  %v183_v48 = vmul.f32 %v3503_v26, %v161_v43  ;;  %v163_v6 = vmul.f32 %v3045_v46, %v3383_v8  ;;  %v102_v62 = vpop.xlane.xlu1 %101 }
  0xab   :  { %v162_v1 = vmul.f32 %v3047_v2, %v3388_v9  ;;  %v136_v9 = vadd.f32 1e-06, %v120_v57  ;;  %v99_v4 = vpop.xlane.xlu0 %98  ;;  %3056 = vrsqrt.f32 %v137_v61  ;;  %v123_v5 = vmul.f32 0.020833334, %v102_v62 }
  0xac   :  { %2559 = vmatmul.mubr.msk.bf16.vlgmr.msra.gmra.mrb[0].mxu0 %vm60_vm0, %v196_v0  ;;  %v197_v54 = vpack.c.bf16 %v183_v48, %v182_v47  ;;  %v185_v59 = vmul.f32 %v3503_v26, %v163_v6  ;;  %v122_v7 = vmul.f32 0.020833334, %v99_v4 }
  0xad   :  { %306 = vmatprep.mubr.bf16.mxu0 %v3308_v53  ;;  %v3049_v56 = vpop.eup %3048  ;;  %v184_v58 = vmul.f32 %v3503_v26, %v162_v1  ;;  %3058 = vrsqrt.f32 %v136_v9  ;;  %v139_v14 = vadd.f32 1e-06, %v123_v5 }
  0xae   :  { %v3051_v60 = vpop.eup %3050  ;;  %v165_v3 = vmul.f32 %v3049_v56, %v3401_v16  ;;  %v138_v15 = vadd.f32 1e-06, %v122_v7 }
  0xaf   :  { %v198_v8 = vpack.c.bf16 %v185_v59, %v184_v58  ;;  %v164_v63 = vmul.f32 %v3051_v60, %v3406_v17  ;;  %v108_v17 = vpop.xlane.xlu1 %107  ;;  %v105_v20 = vpop.xlane.xlu0 %104  ;;  %3060 = vrsqrt.f32 %v139_v14 }
  0xb0   :  { %v187_v12 = vmul.f32 %v3503_v26, %v165_v3  ;;  %v125_v21 = vmul.f32 0.020833334, %v108_v17  ;;  %3062 = vrsqrt.f32 %v138_v15  ;;  %v124_v24 = vmul.f32 0.020833334, %v105_v20 }
  0xb1   :  { %v3053_v10 = vpop.eup %3052  ;;  %v186_v11 = vmul.f32 %v3503_v26, %v164_v63 }
  0xb2   :  { %v3055_v13 = vpop.eup %3054  ;;  %v167_v19 = vmul.f32 %v3053_v10, %v3417_v22  ;;  %v141_v32 = vadd.f32 1e-06, %v125_v21  ;;  %v140_v33 = vadd.f32 1e-06, %v124_v24 }
  0xb3   :  { %v199_v18 = vpack.c.bf16 %v187_v12, %v186_v11  ;;  %v166_v16 = vmul.f32 %v3055_v13, %v3422_v23 }
  0xb4   :  { %2560 = vmatmul.mubr.msk.bf16.gmra.mrb[4].mxu0 %vm60_vm0, %v197_v54  ;;  %v189_v30 = vmul.f32 %v3503_v26, %v167_v19  ;;  %3064 = vrsqrt.f32 %v141_v32 }
  0xb5   :  { %316 = vmatprep.mubr.bf16.mxu0 %v3308_v53  ;;  %v3057_v25 = vpop.eup %3056  ;;  %v188_v27 = vmul.f32 %v3503_v26, %v166_v16  ;;  %3066 = vrsqrt.f32 %v140_v33 }
  0xb6   :  { %v169_v36 = vmul.f32 %v3057_v25, %v3433_v28 }
  0xb7   :  { %v3059_v31 = vpop.eup %3058  ;;  %v200_v23 = vpack.c.bf16 %v189_v30, %v188_v27 }
  0xb8   :  { %v168_v22 = vmul.f32 %v3059_v31, %v3438_v29  ;;  %v191_v39 = vmul.f32 %v3503_v26, %v169_v36 }
  0xb9   :  { %v3061_v37 = vpop.eup %3060 }
  0xba   :  { %v190_v38 = vmul.f32 %v3503_v26, %v168_v22  ;;  %v3063_v0 = vpop.eup %3062  ;;  %v171_v44 = vmul.f32 %v3061_v37, %v3449_v34 }
  0xbb   :  { %v170_v43 = vmul.f32 %v3063_v0, %v3454_v35 }
  0xbc   :  { %2561 = vmatmul.mubr.msk.bf16.gmra.mrb[8].mxu0 %vm60_vm0, %v198_v8  ;;  %v201_v42 = vpack.c.bf16 %v191_v39, %v190_v38  ;;  %v193_v45 = vmul.f32 %v3503_v26, %v171_v44 }
  0xbd   :  { %326 = vmatprep.mubr.bf16.mxu0 %v3308_v53  ;;  %v192_v28 = vmul.f32 %v3503_v26, %v170_v43 }
  0xbe   :  { %v3065_v29 = vpop.eup %3064 }
  0xbf   :  { %v3067_v46 = vpop.eup %3066  ;;  %v202_v2 = vpack.c.bf16 %v193_v45, %v192_v28  ;;  %v173_v48 = vmul.f32 %v3065_v29, %v3465_v40 }
  0xc0   :  { %v172_v47 = vmul.f32 %v3067_v46, %v3470_v41 }
  0xc1   :  { %v195_v34 = vmul.f32 %v3503_v26, %v173_v48 }
  0xc2   :  { %v194_v35 = vmul.f32 %v3503_v26, %v172_v47 }
  0xc4   :  { %2562 = vmatmul.mubr.msk.bf16.gmra.mrb[12].mxu0 %vm60_vm0, %v199_v18  ;;  %v203_v49 = vpack.c.bf16 %v195_v34, %v194_v35 }
  0xc5   :  { %336 = vmatprep.mubr.bf16.mxu0 %v3308_v53 }
  0xcc   :  { %2563 = vmatmul.mubr.msk.bf16.gmra.mrb[16].mxu0 %vm60_vm0, %v200_v23 }
  0xcd   :  { %346 = vmatprep.mubr.bf16.mxu0 %v3308_v53 }
  0xd4   :  { %2564 = vmatmul.mubr.msk.bf16.gmra.mrb[20].mxu0 %vm60_vm0, %v201_v42 }
  0xd5   :  { %356 = vmatprep.mubr.bf16.mxu0 %v3308_v53 }
  0xdc   :  { %2565 = vmatmul.mubr.msk.bf16.gmra.mrb[24].mxu0 %vm60_vm0, %v202_v2 }
  0xdd   :  { %366 = vmatprep.mubr.bf16.mxu0 %v3308_v53 }
  0xe4   :  { %2566 = vmatmul.mubr.msk.bf16.gmra.mrb[28].mxu0 %vm60_vm0, %v203_v49 }
 0x17f   :  { %v298_v50 = vpop.f32.mrb[0].mxu0 }
 0x180   :  { %v300_v51 = vpop.f32.mrb[1].mxu0 }
 0x181   :  { %v302_v1 = vpop.f32.mrb[2].mxu0 }
 0x182   :  { %v385_v6 = vpack.c.bf16 %v302_v1, %v298_v50  ;;  %v304_v52 = vpop.f32.mrb[3].mxu0 }
 0x183   :  { %v3551_v41 = vpack.c.bf16 %v304_v52, %v300_v51 }
 0x184   :  { %397 = vrot.lane.b32.xlu0 %v385_v6, %s3309_s1  ;;  %2770 = vmatprep.mubr.msk.bf16.mxu1 %vm405_vm1, %v385_v6 }
 0x187   :  { %v308_v40 = vpop.f32.mrb[4].mxu0 }
 0x188   :  { %v310_v26 = vpop.f32.mrb[5].mxu0 }
 0x189   :  { %v312_v54 = vpop.f32.mrb[6].mxu0 }
 0x18a   :  { %v3555_v55 = vpack.c.bf16 %v312_v54, %v308_v40  ;;  %v314_v56 = vpop.f32.mrb[7].mxu0 }
 0x18b   :  { %v3557_v57 = vpack.c.bf16 %v314_v56, %v310_v26 }
 0x18c   :  { %399 = vrot.lane.b32.xlu1 %v3555_v55, %s3309_s1 }
 0x18f   :  { %v318_v58 = vpop.f32.mrb[8].mxu0 }
 0x190   :  { %v320_v59 = vpop.f32.mrb[9].mxu0 }
 0x191   :  { %v322_v60 = vpop.f32.mrb[10].mxu0 }
 0x192   :  { %v3561_v61 = vpack.c.bf16 %v322_v60, %v318_v58  ;;  %v324_v9 = vpop.f32.mrb[11].mxu0 }
 0x193   :  { %v3563_v62 = vpack.c.bf16 %v324_v9, %v320_v59 }
 0x194   :  { %401 = vrot.lane.b32.xlu1 %v3561_v61, %s3309_s1 }
 0x197   :  { %v328_v8 = vpop.f32.mrb[12].mxu0 }
 0x198   :  { %677 = vrot.lane.b32.xlu1 %v385_v6, %s3310_s23  ;;  %v330_v63 = vpop.f32.mrb[13].mxu0 }
 0x199   :  { %v332_v3 = vpop.f32.mrb[14].mxu0 }
 0x19a   :  { %v3568_v4 = vpack.c.bf16 %v332_v3, %v328_v8  ;;  %v334_v5 = vpop.f32.mrb[15].mxu0 }
 0x19b   :  { %v3570_v7 = vpack.c.bf16 %v334_v5, %v330_v63 }
 0x19c   :  { %679 = vrot.lane.b32.xlu1 %v3555_v55, %s3310_s23  ;;  %403 = vrot.lane.b32.xlu0 %v3568_v4, %s3309_s1 }
 0x19f   :  { %v338_v10 = vpop.f32.mrb[16].mxu0 }
 0x1a0   :  { %683 = vrot.lane.b32.xlu1 %v3568_v4, %s3310_s23  ;;  %681 = vrot.lane.b32.xlu0 %v3561_v61, %s3310_s23  ;;  %v340_v11 = vpop.f32.mrb[17].mxu0 }
 0x1a1   :  { %v342_v12 = vpop.f32.mrb[18].mxu0 }
 0x1a2   :  { %v3580_v13 = vpack.c.bf16 %v342_v12, %v338_v10  ;;  %v344_v14 = vpop.f32.mrb[19].mxu0 }
 0x1a3   :  { %v3582_v15 = vpack.c.bf16 %v344_v14, %v340_v11 }
 0x1a4   :  { %671 = vrot.lane.b32.xlu1 %v3555_v55, %s3311_s24  ;;  %669 = vrot.lane.b32.xlu0 %v385_v6, %s3311_s24 }
 0x1a7   :  { %v348_v17 = vpop.f32.mrb[20].mxu0 }
 0x1a8   :  { %673 = vrot.lane.b32.xlu0 %v3561_v61, %s3311_s24  ;;  %675 = vrot.lane.b32.xlu1 %v3568_v4, %s3311_s24  ;;  %v350_v18 = vpop.f32.mrb[21].mxu0 }
 0x1a9   :  { %v352_v16 = vpop.f32.mrb[22].mxu0 }
 0x1aa   :  { %v3591_v19 = vpack.c.bf16 %v352_v16, %v348_v17  ;;  %v354_v20 = vpop.f32.mrb[23].mxu0 }
 0x1ab   :  { %v3593_v21 = vpack.c.bf16 %v354_v20, %v350_v18 }
 0x1ac   :  { %1153 = vrot.lane.b32.xlu0 %v3580_v13, %s3309_s1  ;;  %1423 = vrot.lane.b32.xlu1 %v3580_v13, %s3311_s24 }
 0x1af   :  { %v358_v24 = vpop.f32.mrb[24].mxu0 }
 0x1b0   :  { %1431 = vrot.lane.b32.xlu0 %v3580_v13, %s3310_s23  ;;  %1155 = vrot.lane.b32.xlu1 %v3591_v19, %s3309_s1  ;;  %v360_v25 = vpop.f32.mrb[25].mxu0 }
 0x1b1   :  { %v362_v27 = vpop.f32.mrb[26].mxu0 }
 0x1b2   :  { %v3603_v30 = vpack.c.bf16 %v362_v27, %v358_v24  ;;  %v364_v31 = vpop.f32.mrb[27].mxu0 }
 0x1b3   :  { %v3605_v32 = vpack.c.bf16 %v364_v31, %v360_v25 }
 0x1b4   :  { %1425 = vrot.lane.b32.xlu0 %v3591_v19, %s3311_s24  ;;  %1433 = vrot.lane.b32.xlu1 %v3591_v19, %s3310_s23 }
 0x1b7   :  { %v368_v33 = vpop.f32.mrb[28].mxu0 }
 0x1b8   :  { %1157 = vrot.lane.b32.xlu0 %v3603_v30, %s3309_s1  ;;  %1427 = vrot.lane.b32.xlu1 %v3603_v30, %s3311_s24  ;;  %v370_v23 = vpop.f32.mrb[29].mxu0 }
 0x1b9   :  { %v372_v22 = vpop.f32.mrb[30].mxu0 }
 0x1ba   :  { %v3615_v36 = vpack.c.bf16 %v372_v22, %v368_v33  ;;  %v374_v37 = vpop.f32.mrb[31].mxu0 }
 0x1bb   :  { %v3625_v38 = vpack.c.bf16 %v374_v37, %v370_v23 }
 0x1bc   :  { %1159 = vrot.lane.b32.xlu1 %v3615_v36, %s3309_s1  ;;  %1435 = vrot.lane.b32.xlu0 %v3603_v30, %s3310_s23 }
 0x1c0   :  { %1437 = vrot.lane.b32.xlu1 %v3615_v36, %s3310_s23  ;;  %1429 = vrot.lane.b32.xlu0 %v3615_v36, %s3311_s24 }
 0x1f6   :  { %v398_v39 = vpop.permute.xlu0 %397 }
 0x1f7   :  { %2986 = vmatprep.subr.msk.bf16.mxu1 %vm405_vm1, %v398_v39  ;;  %v419_v0 = vsel %vm405_vm1, %v398_v39, 0 }
 0x1f8   :  { %2763 = vmatpush3.bf16.xpose.msra.mxu1 %v419_v0 }
 0x1fe   :  { %v400_v42 = vpop.permute.xlu1 %399 }
 0x1ff   :  { %2987 = vmatprep.subr.msk.bf16.mxu1 %vm405_vm1, %v400_v42  ;;  %v422_v43 = vsel %vm405_vm1, %v400_v42, 0 }
 0x200   :  { %2765 = vmatpush3.bf16.xpose.msra.mxu1 %v422_v43 }
 0x206   :  { %v402_v44 = vpop.permute.xlu1 %401 }
 0x207   :  { %2988 = vmatprep.subr.msk.bf16.mxu1 %vm405_vm1, %v402_v44  ;;  %v425_v29 = vsel %vm405_vm1, %v402_v44, 0 }
 0x208   :  { %2767 = vmatpush3.bf16.xpose.msra.mxu1 %v425_v29 }
 0x20a   :  { %v678_v28 = vpop.permute.xlu1 %677 }
 0x20b   :  { %2990 = vmatprep.subr.msk.bf16.mxu0 %vm405_vm1, %v678_v28  ;;  %v698_v45 = vsel %vm405_vm1, %v678_v28, 0 }
 0x20c   :  { %2795 = vmatpush3.bf16.xpose.msra.mxu0 %v698_v45 }
 0x20e   :  { %v680_v46 = vpop.permute.xlu1 %679  ;;  %v404_v2 = vpop.permute.xlu0 %403 }
 0x20f   :  { %2989 = vmatprep.subr.msk.bf16.mxu1 %vm405_vm1, %v404_v2  ;;  %2991 = vmatprep.subr.msk.bf16.mxu0 %vm405_vm1, %v680_v46  ;;  %v428_v47 = vsel %vm405_vm1, %v404_v2, 0  ;;  %v701_v35 = vsel %vm405_vm1, %v680_v46, 0 }
 0x210   :  { %2769 = vmatpush3.bf16.xpose.msra.mxu1 %v428_v47 }
 0x211   :  { %2778 = vmatprep.subr.bf16.mxu1 %v3551_v41 }
 0x212   :  { %v682_v48 = vpop.permute.xlu0 %681  ;;  %v684_v34 = vpop.permute.xlu1 %683 }
 0x213   :  { %v704_v51 = vsel %vm405_vm1, %v682_v48, 0  ;;  %v707_v40 = vsel %vm405_vm1, %v684_v34, 0 }
 0x214   :  { %2797 = vmatpush3.bf16.xpose.msra.mxu0 %v701_v35 }
 0x215   :  { %2992 = vmatprep.subr.msk.bf16.mxu0 %vm405_vm1, %v682_v48 }
 0x216   :  { %v670_v49 = vpop.permute.xlu0 %669  ;;  %v672_v50 = vpop.permute.xlu1 %671 }
 0x217   :  { %2771 = vmatmul.mubr.msk.bf16.vlgmr.msra.gmra.mrb[0].mxu1 %vm405_vm1, %v3555_v55  ;;  %2802 = vmatprep.mubr.msk.bf16.mxu0 %vm405_vm1, %v670_v49 }
 0x218   :  { %2774 = vmatprep.mubr.msk.bf16.mxu1 %vm405_vm1, %v3561_v61  ;;  %2779 = vmatpush3.bf16.msra.mxu1 %v3551_v41 }
 0x219   :  { %2780 = vmatprep.subr.bf16.mxu1 %v3557_v57 }
 0x21a   :  { %v674_v1 = vpop.permute.xlu0 %673  ;;  %v676_v6 = vpop.permute.xlu1 %675 }
 0x21c   :  { %2781 = vmatpush3.bf16.msra.mxu1 %v3557_v57  ;;  %2799 = vmatpush3.bf16.xpose.msra.mxu0 %v704_v51 }
 0x21d   :  { %2782 = vmatprep.subr.bf16.mxu1 %v3563_v62  ;;  %2993 = vmatprep.subr.msk.bf16.mxu0 %vm405_vm1, %v684_v34 }
 0x21e   :  { %v1154_v52 = vpop.permute.xlu0 %1153  ;;  %v1424_v26 = vpop.permute.xlu1 %1423 }
 0x21f   :  { %2775 = vmatmul.mubr.msk.bf16.gmra.mrb[4].mxu1 %vm405_vm1, %v3568_v4  ;;  %v1174_v55 = vsel %vm405_vm1, %v1154_v52, 0 }
 0x220   :  { %2783 = vmatpush3.bf16.msra.mxu1 %v3563_v62 }
 0x221   :  { %2784 = vmatprep.subr.bf16.mxu1 %v3570_v7 }
 0x222   :  { %v1432_v54 = vpop.permute.xlu0 %1431  ;;  %v1156_v56 = vpop.permute.xlu1 %1155 }
 0x223   :  { %v1177_v60 = vsel %vm405_vm1, %v1156_v56, 0  ;;  %v1452_v4 = vsel %vm405_vm1, %v1432_v54, 0 }
 0x224   :  { %2785 = vmatpush3.bf16.msra.mxu1 %v3570_v7  ;;  %2801 = vmatpush3.bf16.xpose.msra.mxu0 %v707_v40 }
 0x225   :  { %2994 = vmatprep.subr.msk.bf16.mxu0 %vm405_vm1, %v1154_v52 }
 0x226   :  { %v1426_v58 = vpop.permute.xlu0 %1425  ;;  %v1434_v59 = vpop.permute.xlu1 %1433 }
 0x227   :  { %v1455_v5 = vsel %vm405_vm1, %v1434_v59, 0 }
 0x22a   :  { %v1158_v61 = vpop.permute.xlu0 %1157  ;;  %v1428_v9 = vpop.permute.xlu1 %1427 }
 0x22b   :  { %2803 = vmatmul.mubr.msk.bf16.vlgmr.msra.gmra.mrb[32].mxu0 %vm405_vm1, %v672_v50  ;;  %v1180_v8 = vsel %vm405_vm1, %v1158_v61, 0 }
 0x22c   :  { %2806 = vmatprep.mubr.msk.bf16.mxu0 %vm405_vm1, %v674_v1  ;;  %2851 = vmatpush3.bf16.xpose.msra.mxu0 %v1174_v55 }
 0x22d   :  { %2995 = vmatprep.subr.msk.bf16.mxu0 %vm405_vm1, %v1156_v56 }
 0x22e   :  { %v1160_v63 = vpop.permute.xlu1 %1159  ;;  %v1436_v10 = vpop.permute.xlu0 %1435 }
 0x22f   :  { %v1183_v3 = vsel %vm405_vm1, %v1160_v63, 0  ;;  %v1458_v11 = vsel %vm405_vm1, %v1436_v10, 0 }
 0x232   :  { %v1438_v12 = vpop.permute.xlu1 %1437  ;;  %v1430_v14 = vpop.permute.xlu0 %1429 }
 0x233   :  { %2807 = vmatmul.mubr.msk.bf16.gmra.mrb[36].mxu0 %vm405_vm1, %v676_v6 }
 0x234   :  { %2853 = vmatpush3.bf16.xpose.msra.mxu0 %v1177_v60  ;;  %2858 = vmatprep.mubr.msk.bf16.mxu0 %vm405_vm1, %v3580_v13  ;;  %v1461_v13 = vsel %vm405_vm1, %v1438_v12, 0 }
 0x235   :  { %2996 = vmatprep.subr.msk.bf16.mxu0 %vm405_vm1, %v1158_v61 }
 0x23c   :  { %2855 = vmatpush3.bf16.xpose.msra.mxu0 %v1180_v8 }
 0x23d   :  { %2997 = vmatprep.subr.msk.bf16.mxu0 %vm405_vm1, %v1160_v63 }
 0x244   :  { %2857 = vmatpush3.bf16.xpose.msra.mxu0 %v1183_v3 }
 0x245   :  { %2998 = vmatprep.subr.msk.bf16.mxu0 %vm405_vm1, %v1432_v54 }
 0x24b   :  { %2859 = vmatmul.mubr.msk.bf16.vlgmr.msra.gmra.mrb[40].mxu0 %vm405_vm1, %v3591_v19 }
 0x24c   :  { %2862 = vmatprep.mubr.msk.bf16.mxu0 %vm405_vm1, %v3603_v30  ;;  %2883 = vmatpush3.bf16.xpose.msra.mxu0 %v1452_v4 }
 0x24d   :  { %2999 = vmatprep.subr.msk.bf16.mxu0 %vm405_vm1, %v1434_v59 }
 0x253   :  { %2863 = vmatmul.mubr.msk.bf16.gmra.mrb[44].mxu0 %vm405_vm1, %v3615_v36 }
 0x254   :  { %2885 = vmatpush3.bf16.xpose.msra.mxu0 %v1455_v5  ;;  %2890 = vmatprep.mubr.msk.bf16.mxu0 %vm405_vm1, %v1424_v26 }
 0x255   :  { %3000 = vmatprep.subr.msk.bf16.mxu0 %vm405_vm1, %v1436_v10 }
 0x25c   :  { %2887 = vmatpush3.bf16.xpose.msra.mxu0 %v1458_v11 }
 0x25d   :  { %3001 = vmatprep.subr.msk.bf16.mxu0 %vm405_vm1, %v1438_v12 }
 0x264   :  { %2889 = vmatpush3.bf16.xpose.msra.mxu0 %v1461_v13 }
 0x26b   :  { %2891 = vmatmul.mubr.msk.bf16.vlgmr.msra.gmra.mrb[48].mxu0 %vm405_vm1, %v1426_v58 }
 0x26c   :  { %2894 = vmatprep.mubr.msk.bf16.mxu0 %vm405_vm1, %v1428_v9 }
 0x273   :  { %2895 = vmatmul.mubr.msk.bf16.gmra.mrb[52].mxu0 %vm405_vm1, %v1430_v14 }
 0x274   :  { %2138 = vmatprep.mubr.bf16.mxu0 %v3308_v53 }
 0x2ea   :  { %v3690_v17 = vpop.f32.mrb[0].mxu1 }
 0x2eb   :  { %v3692_v18 = vpop.f32.mrb[1].mxu1  ;;  %v502_v16 = vsel %vm495_vm2, %v3690_v17, -inf }
 0x2ec   :  { %503 = vmax.xlane.f32.xlu0 %v502_v16  ;;  %v3696_v19 = vpop.f32.mrb[2].mxu1  ;;  %v496_v42 = vsel %vm495_vm2, %v3692_v18, -inf }
 0x2ed   :  { %v3698_v20 = vpop.f32.mrb[3].mxu1  ;;  %v505_v24 = vsel %vm495_vm2, %v3696_v19, -inf }
 0x2ee   :  { %v499_v30 = vsel %vm495_vm2, %v3698_v20, -inf }
 0x2f0   :  { %506 = vmax.xlane.f32.xlu0 %v505_v24 }
 0x2f2   :  { %v3702_v25 = vpop.f32.mrb[4].mxu1 }
 0x2f3   :  { %v3704_v27 = vpop.f32.mrb[5].mxu1  ;;  %v514_v44 = vsel %vm495_vm2, %v3702_v25, -inf }
 0x2f4   :  { %500 = vmax.xlane.f32.xlu0 %v499_v30  ;;  %v3708_v31 = vpop.f32.mrb[6].mxu1  ;;  %v508_v2 = vsel %vm495_vm2, %v3704_v27, -inf }
 0x2f5   :  { %v3710_v33 = vpop.f32.mrb[7].mxu1  ;;  %v517_v48 = vsel %vm495_vm2, %v3708_v31, -inf }
 0x2f6   :  { %v511_v34 = vsel %vm495_vm2, %v3710_v33, -inf }
 0x2fe   :  { %v3712_v23 = vpop.f32.mrb[32].mxu0 }
 0x2ff   :  { %v3714_v22 = vpop.f32.mrb[33].mxu0  ;;  %v780_v36 = vsel %vm495_vm2, %v3712_v23, -inf }
 0x300   :  { %781 = vmax.xlane.f32.xlu1 %v780_v36  ;;  %v3718_v37 = vpop.f32.mrb[34].mxu0  ;;  %v774_v28 = vsel %vm495_vm2, %v3714_v22, -inf }
 0x301   :  { %v3720_v39 = vpop.f32.mrb[35].mxu0  ;;  %v783_v47 = vsel %vm495_vm2, %v3718_v37, -inf }
 0x302   :  { %v777_v0 = vsel %vm495_vm2, %v3720_v39, -inf }
 0x303   :  { %778 = vmax.xlane.f32.xlu0 %v777_v0 }
 0x304   :  { %497 = vmax.xlane.f32.xlu1 %v496_v42 }
 0x306   :  { %v3726_v43 = vpop.f32.mrb[36].mxu0 }
 0x307   :  { %515 = vmax.xlane.f32.xlu0 %v514_v44  ;;  %v3730_v29 = vpop.f32.mrb[37].mxu0  ;;  %v792_v35 = vsel %vm495_vm2, %v3726_v43, -inf }
 0x308   :  { %775 = vmax.xlane.f32.xlu1 %v774_v28  ;;  %v3734_v45 = vpop.f32.mrb[38].mxu0  ;;  %v786_v49 = vsel %vm495_vm2, %v3730_v29, -inf }
 0x309   :  { %v3736_v46 = vpop.f32.mrb[39].mxu0  ;;  %v795_v51 = vsel %vm495_vm2, %v3734_v45, -inf }
 0x30a   :  { %v789_v50 = vsel %vm495_vm2, %v3736_v46, -inf }
 0x30b   :  { %509 = vmax.xlane.f32.xlu0 %v508_v2 }
 0x30c   :  { %784 = vmax.xlane.f32.xlu1 %v783_v47 }
 0x30f   :  { %518 = vmax.xlane.f32.xlu0 %v517_v48 }
 0x310   :  { %793 = vmax.xlane.f32.xlu1 %v792_v35 }
 0x313   :  { %512 = vmax.xlane.f32.xlu0 %v511_v34 }
 0x314   :  { %787 = vmax.xlane.f32.xlu1 %v786_v49 }
 0x317   :  { %790 = vmax.xlane.f32.xlu0 %v789_v50 }
 0x318   :  { %796 = vmax.xlane.f32.xlu1 %v795_v51 }
 0x31e   :  { %v3754_v1 = vpop.f32.mrb[40].mxu0 }
 0x31f   :  { %v3756_v6 = vpop.f32.mrb[41].mxu0 }
 0x320   :  { %v3758_v52 = vpop.f32.mrb[42].mxu0 }
 0x321   :  { %v3760_v40 = vpop.f32.mrb[43].mxu0  ;;  %v1259_v3 = vsel %vm495_vm2, %v3758_v52, -inf }
 0x322   :  { %v1253_v4 = vsel %vm495_vm2, %v3760_v40, -inf }
 0x326   :  { %v3762_v26 = vpop.f32.mrb[44].mxu0 }
 0x327   :  { %v3764_v54 = vpop.f32.mrb[45].mxu0 }
 0x328   :  { %v3766_v55 = vpop.f32.mrb[46].mxu0  ;;  %v1262_v63 = vsel %vm495_vm2, %v3764_v54, -inf }
 0x329   :  { %864 = vrot.lane.b32.xlu1 %v3557_v57, %s3311_s24  ;;  %v3770_v56 = vpop.f32.mrb[47].mxu0  ;;  %v1256_v57 = vsel %vm495_vm2, %v3754_v1, -inf }
 0x32a   :  { %v1265_v5 = vsel %vm495_vm2, %v3770_v56, -inf }
 0x32d   :  { %866 = vrot.lane.b32.xlu1 %v3563_v62, %s3311_s24  ;;  %862 = vrot.lane.b32.xlu0 %v3551_v41, %s3311_s24 }
 0x331   :  { %868 = vrot.lane.b32.xlu1 %v3570_v7, %s3311_s24  ;;  %v1250_v7 = vsel %vm495_vm2, %v3756_v6, -inf }
 0x33e   :  { %v3778_v58 = vpop.f32.mrb[48].mxu0 }
 0x33f   :  { %v3780_v59 = vpop.f32.mrb[49].mxu0 }
 0x340   :  { %v3782_v60 = vpop.f32.mrb[50].mxu0 }
 0x341   :  { %v3784_v61 = vpop.f32.mrb[51].mxu0 }
 0x346   :  { %v3788_v9 = vpop.f32.mrb[52].mxu0 }
 0x347   :  { %v3790_v62 = vpop.f32.mrb[53].mxu0 }
 0x348   :  { %v3792_v41 = vpop.f32.mrb[54].mxu0 }
 0x349   :  { %v3794_v8 = vpop.f32.mrb[55].mxu0 }
 0x34c   :  { %1257 = vmax.xlane.f32.xlu0 %v1256_v57 }
 0x350   :  { %1251 = vmax.xlane.f32.xlu0 %v1250_v7 }
 0x354   :  { %1263 = vmax.xlane.f32.xlu0 %v1262_v63 }
 0x355   :  { %1260 = vmax.xlane.f32.xlu1 %v1259_v3 }
 0x359   :  { %1254 = vmax.xlane.f32.xlu1 %v1253_v4 }
 0x35d   :  { %1266 = vmax.xlane.f32.xlu1 %v1265_v5 }
 0x379   :  { %v504_v10 = vpop.xlane.xlu0 %503 }
 0x37a   :  { %v522_v11 = vsub.f32 %v3690_v17, %v504_v10 }
 0x37c   :  { %v532_v12 = vmul.f32 1.442695, %v522_v11 }
 0x37d   :  { %v507_v13 = vpop.xlane.xlu0 %506 }
 0x37e   :  { %v523_v14 = vsub.f32 %v3696_v19, %v507_v13  ;;  %3068 = vpow2.f32 %v532_v12 }
 0x380   :  { %v534_v16 = vmul.f32 1.442695, %v523_v14 }
 0x381   :  { %v501_v24 = vpop.xlane.xlu0 %500 }
 0x382   :  { %3070 = vpow2.f32 %v534_v16  ;;  %v521_v0 = vsub.f32 %v3698_v20, %v501_v24 }
 0x384   :  { %v530_v19 = vmul.f32 1.442695, %v521_v0 }
 0x388   :  { %v3808_v30 = vpop.eup %3068 }
 0x38c   :  { %v3810_v36 = vpop.eup %3070 }
 0x38d   :  { %v577_v42 = vpack.c.bf16 %v3810_v36, %v3808_v30  ;;  %v782_v44 = vpop.xlane.xlu1 %781  ;;  %v553_v17 = vsel %vm495_vm2, %v3810_v36, 0.0 }
 0x38e   :  { %v800_v28 = vsub.f32 %v3712_v23, %v782_v44  ;;  %554 = vadd.xlane.f32.xlu1 %v553_v17 }
 0x390   :  { %v810_v2 = vmul.f32 1.442695, %v800_v28  ;;  %v779_v47 = vpop.xlane.xlu0 %778 }
 0x391   :  { %v799_v48 = vsub.f32 %v3720_v39, %v779_v47  ;;  %v498_v35 = vpop.xlane.xlu1 %497 }
 0x392   :  { %3072 = vpow2.f32 %v810_v2  ;;  %v520_v34 = vsub.f32 %v3692_v18, %v498_v35 }
 0x393   :  { %v808_v20 = vmul.f32 1.442695, %v799_v48  ;;  %3074 = vpow2.f32 %v530_v19 }
 0x394   :  { %v528_v49 = vmul.f32 1.442695, %v520_v34  ;;  %v516_v50 = vpop.xlane.xlu0 %515 }
 0x395   :  { %3076 = vpow2.f32 %v808_v20  ;;  %v776_v51 = vpop.xlane.xlu1 %775  ;;  %v526_v23 = vsub.f32 %v3702_v25, %v516_v50 }
 0x396   :  { %3078 = vpow2.f32 %v528_v49  ;;  %v798_v57 = vsub.f32 %v3714_v22, %v776_v51 }
 0x397   :  { %v540_v5 = vmul.f32 1.442695, %v526_v23 }
 0x398   :  { %v806_v7 = vmul.f32 1.442695, %v798_v57  ;;  %v510_v63 = vpop.xlane.xlu0 %509 }
 0x399   :  { %v785_v3 = vpop.xlane.xlu1 %784  ;;  %v524_v4 = vsub.f32 %v3704_v27, %v510_v63 }
 0x39a   :  { %3080 = vpow2.f32 %v806_v7  ;;  %v801_v39 = vsub.f32 %v3718_v37, %v785_v3 }
 0x39b   :  { %v536_v37 = vmul.f32 1.442695, %v524_v4 }
 0x39c   :  { %v3824_v18 = vpop.eup %3072  ;;  %v812_v10 = vmul.f32 1.442695, %v801_v39  ;;  %v519_v11 = vpop.xlane.xlu0 %518 }
 0x39d   :  { %v527_v12 = vsub.f32 %v3708_v31, %v519_v11  ;;  %v794_v13 = vpop.xlane.xlu1 %793  ;;  %v828_v22 = vsel %vm495_vm2, %v3824_v18, 0.0  ;;  %v3075_v25 = vpop.eup %3074 }
 0x39e   :  { %3082 = vpow2.f32 %v812_v10  ;;  %v804_v14 = vsub.f32 %v3726_v43, %v794_v13  ;;  %829 = vadd.xlane.f32.xlu0 %v828_v22  ;;  %v550_v43 = vsel %vm495_vm2, %v3808_v30, 0.0 }
 0x39f   :  { %v3830_v16 = vpop.eup %3076  ;;  %v542_v27 = vmul.f32 1.442695, %v527_v12  ;;  %3084 = vpow2.f32 %v540_v5 }
 0x3a0   :  { %v3079_v24 = vpop.eup %3078  ;;  %v818_v36 = vmul.f32 1.442695, %v804_v14  ;;  %v513_v0 = vpop.xlane.xlu0 %512  ;;  %v825_v31 = vsel %vm495_vm2, %v3830_v16, 0.0 }
 0x3a1   :  { %3086 = vpow2.f32 %v542_v27  ;;  %v525_v44 = vsub.f32 %v3710_v33, %v513_v0  ;;  %v788_v17 = vpop.xlane.xlu1 %787  ;;  %826 = vadd.xlane.f32.xlu1 %v825_v31  ;;  %v576_v28 = vpack.c.bf16 %v3075_v25, %v3079_v24  ;;  %v547_v33 = vsel %vm495_vm2, %v3075_v25, 0.0 }
 0x3a2   :  { %v802_v19 = vsub.f32 %v3730_v29, %v788_v17  ;;  %551 = vadd.xlane.f32.xlu0 %v550_v43  ;;  %3088 = vpow2.f32 %v536_v37  ;;  %v1268_v31 = vsel %vm495_vm2, %v3762_v26, -inf  ;;  %v1271_v43 = vsel %vm495_vm2, %v3766_v55, -inf }
 0x3a3   :  { %v538_v2 = vmul.f32 1.442695, %v525_v44  ;;  %2786 = vmatprep.mubr.msk.bf16.mxu1 %vm495_vm2, %v576_v28  ;;  %3090 = vpow2.f32 %v818_v36  ;;  %v1528_v28 = vsel %vm495_vm2, %v3780_v59, -inf }
 0x3a4   :  { %v3081_v47 = vpop.eup %3080  ;;  %v814_v48 = vmul.f32 1.442695, %v802_v19  ;;  %2787 = vmatmul.mubr.msk.bf16.vlgmr.msra.gmra.mrb[8].mxu1 %vm495_vm2, %v577_v42  ;;  %v791_v35 = vpop.xlane.xlu0 %790  ;;  %v1531_v19 = vsel %vm495_vm2, %v3784_v61, -inf }
 0x3a5   :  { %3092 = vpow2.f32 %v538_v2  ;;  %v803_v34 = vsub.f32 %v3736_v46, %v791_v35  ;;  %v797_v30 = vpop.xlane.xlu1 %796  ;;  %548 = vadd.xlane.f32.xlu1 %v547_v33  ;;  %v822_v29 = vsel %vm495_vm2, %v3081_v47, 0.0  ;;  %v854_v20 = vpack.c.bf16 %v3830_v16, %v3081_v47 }
 0x3a6   :  { %v805_v49 = vsub.f32 %v3734_v45, %v797_v30  ;;  %823 = vadd.xlane.f32.xlu0 %v822_v29  ;;  %3094 = vpow2.f32 %v814_v48  ;;  %v544_v46 = vsel %vm495_vm2, %v3079_v24, 0.0  ;;  %v1534_v2 = vsel %vm495_vm2, %v3778_v58, -inf }
 0x3a7   :  { %v816_v50 = vmul.f32 1.442695, %v803_v34  ;;  %v1537_v47 = vsel %vm495_vm2, %v3782_v60, -inf  ;;  %v1540_v48 = vsel %vm495_vm2, %v3790_v62, -inf  ;;  %v1546_v33 = vsel %vm495_vm2, %v3788_v9, -inf }
 0x3a8   :  { %v3083_v51 = vpop.eup %3082  ;;  %v820_v57 = vmul.f32 1.442695, %v805_v49  ;;  %v863_v42 = vpop.permute.xlu0 %862  ;;  %v1543_v34 = vsel %vm495_vm2, %v3794_v8, -inf  ;;  %v1549_v30 = vsel %vm495_vm2, %v3792_v41, -inf }
 0x3a9   :  { %v855_v23 = vpack.c.bf16 %v3083_v51, %v3824_v18  ;;  %3096 = vpow2.f32 %v816_v50  ;;  %v865_v7 = vpop.permute.xlu1 %864  ;;  %2810 = vmatprep.subr.bf16.mxu1 %v863_v42  ;;  %v3085_v63 = vpop.eup %3084  ;;  %v831_v5 = vsel %vm495_vm2, %v3083_v51, 0.0 }
 0x3aa   :  { %3098 = vpow2.f32 %v820_v57  ;;  %545 = vadd.xlane.f32.xlu0 %v544_v46  ;;  %2811 = vmatpush3.bf16.msra.mxu1 %v863_v42  ;;  %v562_v27 = vsel %vm495_vm2, %v3085_v63, 0.0 }
 0x3ab   :  { %v3087_v3 = vpop.eup %3086  ;;  %2812 = vmatprep.subr.bf16.mxu1 %v865_v7 }
 0x3ac   :  { %v579_v45 = vpack.c.bf16 %v3087_v3, %v3085_v63  ;;  %v3089_v39 = vpop.eup %3088  ;;  %v565_v0 = vsel %vm495_vm2, %v3087_v3, 0.0 }
 0x3ad   :  { %v867_v4 = vpop.permute.xlu1 %866  ;;  %v3091_v10 = vpop.eup %3090  ;;  %v556_v17 = vsel %vm495_vm2, %v3089_v39, 0.0 }
 0x3ae   :  { %832 = vadd.xlane.f32.xlu0 %v831_v5  ;;  %2813 = vmatpush3.bf16.msra.mxu1 %v865_v7  ;;  %v840_v13 = vsel %vm495_vm2, %v3091_v10, 0.0 }
 0x3af   :  { %v3093_v18 = vpop.eup %3092  ;;  %2814 = vmatprep.subr.bf16.mxu1 %v867_v4 }
 0x3b0   :  { %v578_v11 = vpack.c.bf16 %v3093_v18, %v3089_v39  ;;  %v3095_v22 = vpop.eup %3094  ;;  %v559_v35 = vsel %vm495_vm2, %v3093_v18, 0.0 }
 0x3b1   :  { %v869_v12 = vpop.permute.xlu1 %868  ;;  %v834_v36 = vsel %vm495_vm2, %v3095_v22, 0.0 }
 0x3b2   :  { %841 = vadd.xlane.f32.xlu0 %v840_v13  ;;  %2790 = vmatprep.mubr.msk.bf16.mxu1 %vm495_vm2, %v578_v11 }
 0x3b3   :  { %v3097_v25 = vpop.eup %3096  ;;  %2815 = vmatpush3.bf16.msra.mxu1 %v867_v4 }
 0x3b4   :  { %v3099_v14 = vpop.eup %3098  ;;  %2791 = vmatmul.mubr.msk.bf16.gmra.mrb[12].mxu1 %vm495_vm2, %v579_v45  ;;  %2816 = vmatprep.subr.bf16.mxu1 %v869_v12  ;;  %v856_v16 = vpack.c.bf16 %v3097_v25, %v3095_v22  ;;  %v837_v44 = vsel %vm495_vm2, %v3097_v25, 0.0  ;;  %v3917_v22 = vld [vmem:[%s4522_s3 + $0x10] sm:$0xff]   ;;  %v3924_v25 = vld [vmem:[%s4522_s3 + $0x18] sm:$0xff]  }
 0x3b5   :  { %2818 = vmatprep.mubr.msk.bf16.mxu1 %vm495_vm2, %v854_v20  ;;  %v843_v37 = vsel %vm495_vm2, %v3099_v14, 0.0  ;;  %v857_v24 = vpack.c.bf16 %v3099_v14, %v3091_v10  ;;  %v3931_v14 = vld [vmem:[%s4522_s3] sm:$0xff]  }
 0x3b6   :  { %844 = vadd.xlane.f32.xlu1 %v843_v37  ;;  %563 = vadd.xlane.f32.xlu0 %v562_v27 }
 0x3b7   :  { %2817 = vmatpush3.bf16.msra.mxu1 %v869_v12 }
 0x3b8   :  { %2826 = vmatprep.subr.bf16.mxu1 %v3917_v22 }
 0x3ba   :  { %835 = vadd.xlane.f32.xlu0 %v834_v36  ;;  %566 = vadd.xlane.f32.xlu1 %v565_v0 }
 0x3bc   :  { %2819 = vmatmul.mubr.msk.bf16.vlgmr.msra.gmra.mrb[16].mxu1 %vm495_vm2, %v855_v23 }
 0x3bd   :  { %2822 = vmatprep.mubr.msk.bf16.mxu1 %vm495_vm2, %v856_v16  ;;  %2827 = vmatpush3.bf16.msra.mxu1 %v3917_v22 }
 0x3be   :  { %1269 = vmax.xlane.f32.xlu0 %v1268_v31  ;;  %838 = vadd.xlane.f32.xlu1 %v837_v44 }
 0x3bf   :  { %2828 = vmatprep.subr.bf16.mxu1 %v3924_v25 }
 0x3c1   :  { %2829 = vmatpush3.bf16.msra.mxu1 %v3924_v25 }
 0x3c2   :  { %557 = vadd.xlane.f32.xlu0 %v556_v17  ;;  %1272 = vmax.xlane.f32.xlu1 %v1271_v43 }
 0x3c3   :  { %2838 = vmatprep.subr.bf16.mxu1 %v3931_v14 }
 0x3c4   :  { %2823 = vmatmul.mubr.msk.bf16.gmra.mrb[20].mxu1 %vm495_vm2, %v857_v24 }
 0x3c6   :  { %1529 = vmax.xlane.f32.xlu0 %v1528_v28  ;;  %1532 = vmax.xlane.f32.xlu1 %v1531_v19 }
 0x3ca   :  { %1535 = vmax.xlane.f32.xlu0 %v1534_v2  ;;  %1538 = vmax.xlane.f32.xlu1 %v1537_v47 }
 0x3ce   :  { %1541 = vmax.xlane.f32.xlu0 %v1540_v48  ;;  %560 = vadd.xlane.f32.xlu1 %v559_v35 }
 0x3d2   :  { %1547 = vmax.xlane.f32.xlu0 %v1546_v33  ;;  %1544 = vmax.xlane.f32.xlu1 %v1543_v34 }
 0x3d6   :  { %1550 = vmax.xlane.f32.xlu1 %v1549_v30 }
 0x3d9   :  { %v1258_v29 = vpop.xlane.xlu0 %1257 }
 0x3da   :  { %v1276_v20 = vsub.f32 %v3754_v1, %v1258_v29 }
 0x3dc   :  { %v1286_v51 = vmul.f32 1.442695, %v1276_v20 }
 0x3dd   :  { %v1252_v49 = vpop.xlane.xlu0 %1251 }
 0x3de   :  { %v1274_v50 = vsub.f32 %v3756_v6, %v1252_v49  ;;  %3100 = vpow2.f32 %v1286_v51 }
 0x3e0   :  { %v1282_v46 = vmul.f32 1.442695, %v1274_v50 }
 0x3e1   :  { %v1264_v42 = vpop.xlane.xlu0 %1263 }
 0x3e2   :  { %v1261_v57 = vpop.xlane.xlu1 %1260  ;;  %v1278_v63 = vsub.f32 %v3764_v54, %v1264_v42 }
 0x3e3   :  { %v1277_v23 = vsub.f32 %v3758_v52, %v1261_v57 }
 0x3e4   :  { %v1290_v6 = vmul.f32 1.442695, %v1278_v63 }
 0x3e5   :  { %v1288_v7 = vmul.f32 1.442695, %v1277_v23 }
 0x3e6   :  { %v1255_v3 = vpop.xlane.xlu1 %1254 }
 0x3e7   :  { %3102 = vpow2.f32 %v1288_v7  ;;  %v1275_v45 = vsub.f32 %v3760_v40, %v1255_v3  ;;  %1618 = vrot.lane.b32.xlu1 %v3593_v21, %s3311_s24 }
 0x3e8   :  { %1616 = vrot.lane.b32.xlu0 %v3582_v15, %s3311_s24  ;;  %3104 = vpow2.f32 %v1282_v46  ;;  %v3896_v40 = vpop.eup %3100 }
 0x3e9   :  { %v1284_v1 = vmul.f32 1.442695, %v1275_v45 }
 0x3ea   :  { %v1267_v39 = vpop.xlane.xlu1 %1266 }
 0x3eb   :  { %3106 = vpow2.f32 %v1284_v1  ;;  %v1279_v52 = vsub.f32 %v3770_v56, %v1267_v39  ;;  %1620 = vrot.lane.b32.xlu1 %v3605_v32, %s3311_s24 }
 0x3ec   :  { %3108 = vpow2.f32 %v1290_v6 }
 0x3ed   :  { %v1292_v54 = vmul.f32 1.442695, %v1279_v52 }
 0x3ef   :  { %3110 = vpow2.f32 %v1292_v54  ;;  %1622 = vrot.lane.b32.xlu1 %v3625_v38, %s3311_s24 }
 0x3f1   :  { %v3898_v4 = vpop.eup %3102 }
 0x3f2   :  { %v1331_v5 = vpack.c.bf16 %v3898_v4, %v3896_v40  ;;  %v3902_v10 = vpop.eup %3104 }
 0x3f5   :  { %v3904_v18 = vpop.eup %3106 }
 0x3f6   :  { %v1330_v56 = vpack.c.bf16 %v3904_v18, %v3902_v10  ;;  %v3908_v11 = vpop.eup %3108 }
 0x3f9   :  { %v3910_v12 = vpop.eup %3110 }
 0x3fa   :  { %v1332_v13 = vpack.c.bf16 %v3910_v12, %v3908_v11 }
 0x41b   :  { %v3940_v24 = vpop.xlane.xlu1 %554 }
 0x42b   :  { %v3934_v16 = vpop.xlane.xlu0 %829 }
 0x42e   :  { %v3944_v0 = vpop.xlane.xlu1 %826 }
 0x42f   :  { %v3936_v37 = vpop.xlane.xlu0 %551 }
 0x432   :  { %v3948_v44 = vpop.xlane.xlu1 %548 }
 0x433   :  { %v3938_v27 = vpop.xlane.xlu0 %823 }
 0x437   :  { %v3942_v36 = vpop.xlane.xlu0 %545 }
 0x43b   :  { %v3946_v31 = vpop.xlane.xlu0 %832 }
 0x43f   :  { %v3950_v17 = vpop.xlane.xlu0 %841 }
 0x443   :  { %v3952_v43 = vpop.xlane.xlu1 %844  ;;  %v3954_v28 = vpop.xlane.xlu0 %563 }
 0x447   :  { %v3956_v19 = vpop.xlane.xlu1 %566  ;;  %v3958_v2 = vpop.xlane.xlu0 %835 }
 0x44b   :  { %v3960_v47 = vpop.xlane.xlu1 %838  ;;  %v1270_v48 = vpop.xlane.xlu0 %1269 }
 0x44c   :  { %v1280_v35 = vsub.f32 %v3762_v26, %v1270_v48 }
 0x44e   :  { %v1294_v33 = vmul.f32 1.442695, %v1280_v35 }
 0x44f   :  { %v1273_v34 = vpop.xlane.xlu1 %1272  ;;  %v3963_v30 = vpop.xlane.xlu0 %557 }
 0x450   :  { %v1281_v29 = vsub.f32 %v3766_v55, %v1273_v34  ;;  %3112 = vpow2.f32 %v1294_v33 }
 0x452   :  { %v1296_v20 = vmul.f32 1.442695, %v1281_v29 }
 0x453   :  { %v1533_v49 = vpop.xlane.xlu1 %1532  ;;  %v1530_v50 = vpop.xlane.xlu0 %1529 }
 0x454   :  { %3114 = vpow2.f32 %v1296_v20  ;;  %v1553_v51 = vsub.f32 %v3784_v61, %v1533_v49  ;;  %v1552_v57 = vsub.f32 %v3780_v59, %v1530_v50 }
 0x456   :  { %v1562_v42 = vmul.f32 1.442695, %v1553_v51  ;;  %v1560_v23 = vmul.f32 1.442695, %v1552_v57 }
 0x457   :  { %v1539_v7 = vpop.xlane.xlu1 %1538  ;;  %v1536_v46 = vpop.xlane.xlu0 %1535 }
 0x458   :  { %3116 = vpow2.f32 %v1562_v42  ;;  %v1555_v26 = vsub.f32 %v3782_v60, %v1539_v7  ;;  %v1554_v63 = vsub.f32 %v3778_v58, %v1536_v46 }
 0x459   :  { %3118 = vpow2.f32 %v1560_v23 }
 0x45a   :  { %v1566_v55 = vmul.f32 1.442695, %v1555_v26  ;;  %v1564_v3 = vmul.f32 1.442695, %v1554_v63  ;;  %v3973_v6 = vpop.eup %3112 }
 0x45b   :  { %v3970_v45 = vpop.xlane.xlu1 %560  ;;  %v1542_v1 = vpop.xlane.xlu0 %1541 }
 0x45c   :  { %3120 = vpow2.f32 %v1566_v55  ;;  %v1556_v61 = vsub.f32 %v3790_v62, %v1542_v1 }
 0x45d   :  { %3122 = vpow2.f32 %v1564_v3 }
 0x45e   :  { %v3975_v59 = vpop.eup %3114  ;;  %v1568_v39 = vmul.f32 1.442695, %v1556_v61 }
 0x45f   :  { %v1545_v52 = vpop.xlane.xlu1 %1544  ;;  %v1548_v54 = vpop.xlane.xlu0 %1547  ;;  %v1333_v58 = vpack.c.bf16 %v3975_v59, %v3973_v6 }
 0x460   :  { %v1557_v60 = vsub.f32 %v3794_v8, %v1545_v52  ;;  %v1558_v48 = vsub.f32 %v3788_v9, %v1548_v54  ;;  %3124 = vpow2.f32 %v1568_v39  ;;  %v1301_v39 = vsel %vm495_vm2, %v3904_v18, 0.0 }
 0x462   :  { %v3981_v35 = vpop.eup %3116  ;;  %v1570_v33 = vmul.f32 1.442695, %v1557_v60  ;;  %v1572_v62 = vmul.f32 1.442695, %v1558_v48  ;;  %v1298_v48 = vsel %vm495_vm2, %v3902_v10, 0.0 }
 0x463   :  { %v3983_v34 = vpop.eup %3118  ;;  %v1551_v29 = vpop.xlane.xlu1 %1550  ;;  %v1579_v20 = vsel %vm495_vm2, %v3981_v35, 0.0 }
 0x464   :  { %3126 = vpow2.f32 %v1570_v33  ;;  %v1559_v49 = vsub.f32 %v3792_v41, %v1551_v29  ;;  %1580 = vadd.xlane.f32.xlu1 %v1579_v20  ;;  %v1576_v8 = vsel %vm495_vm2, %v3983_v34, 0.0  ;;  %v1608_v9 = vpack.c.bf16 %v3981_v35, %v3983_v34  ;;  %v3293_v34 = vld [vmem:[%s4519_s0] sm:$0xff] }
 0x465   :  { %1577 = vadd.xlane.f32.xlu0 %v1576_v8  ;;  %3128 = vpow2.f32 %v1572_v62 }
 0x466   :  { %v3992_v50 = vpop.eup %3120  ;;  %v1574_v51 = vmul.f32 1.442695, %v1559_v49 }
 0x467   :  { %v3994_v57 = vpop.eup %3122  ;;  %v1585_v23 = vsel %vm495_vm2, %v3992_v50, 0.0 }
 0x468   :  { %v1609_v42 = vpack.c.bf16 %v3992_v50, %v3994_v57  ;;  %3130 = vpow2.f32 %v1574_v51  ;;  %v1582_v41 = vsel %vm495_vm2, %v3994_v57, 0.0 }
 0x469   :  { %1583 = vadd.xlane.f32.xlu0 %v1582_v41  ;;  %3132 = vrcp.f32 %v3936_v37  ;;  %v1307_v41 = vsel %vm495_vm2, %v3898_v4, 0.0 }
 0x46a   :  { %v4002_v7 = vpop.eup %3124  ;;  %3134 = vrcp.f32 %v3942_v36 }
 0x46b   :  { %3136 = vrcp.f32 %v3940_v24  ;;  %v1588_v55 = vsel %vm495_vm2, %v4002_v7, 0.0 }
 0x46c   :  { %3138 = vrcp.f32 %v3948_v44 }
 0x46d   :  { %1586 = vadd.xlane.f32.xlu0 %v1585_v23  ;;  %3140 = vrcp.f32 %v3954_v28  ;;  %v1319_v28 = vsel %vm495_vm2, %v3975_v59, 0.0 }
 0x46e   :  { %v4005_v46 = vpop.eup %3126  ;;  %3142 = vrcp.f32 %v3963_v30 }
 0x46f   :  { %v1591_v26 = vsel %vm495_vm2, %v4005_v46, 0.0  ;;  %v1610_v63 = vpack.c.bf16 %v4005_v46, %v4002_v7  ;;  %v4016_v37 = vpop.eup %3128  ;;  %3144 = vrcp.f32 %v3956_v19  ;;  %v3295_v46 = vld [vmem:[%s4519_s0 + $0x8] sm:$0xff] }
 0x470   :  { %1592 = vadd.xlane.f32.xlu1 %v1591_v26  ;;  %v1594_v1 = vsel %vm495_vm2, %v4016_v37, 0.0  ;;  %v1304_v26 = vsel %vm495_vm2, %v3896_v40, 0.0  ;;  %3146 = vrcp.f32 %v3970_v45 }
 0x471   :  { %1589 = vadd.xlane.f32.xlu0 %v1588_v55  ;;  %3148 = vrcp.f32 %v3934_v16 }
 0x472   :  { %v4018_v3 = vpop.eup %3130  ;;  %3150 = vrcp.f32 %v3938_v27 }
 0x473   :  { %v1597_v24 = vsel %vm495_vm2, %v4018_v3, 0.0  ;;  %v1611_v36 = vpack.c.bf16 %v4018_v3, %v4016_v37  ;;  %v3133_v44 = vpop.eup %3132  ;;  %3152 = vrcp.f32 %v3946_v31 }
 0x474   :  { %1598 = vadd.xlane.f32.xlu1 %v1597_v24  ;;  %v3135_v52 = vpop.eup %3134  ;;  %v1313_v24 = vsel %vm495_vm2, %v3910_v12, 0.0  ;;  %3154 = vrcp.f32 %v3944_v0 }
 0x475   :  { %1595 = vadd.xlane.f32.xlu0 %v1594_v1  ;;  %v3137_v33 = vpop.eup %3136  ;;  %v1310_v1 = vsel %vm495_vm2, %v3908_v11, 0.0  ;;  %3156 = vrcp.f32 %v3950_v17 }
 0x476   :  { %v3139_v20 = vpop.eup %3138  ;;  %3158 = vrcp.f32 %v3958_v2  ;;  %v4069_v2 = vld [vmem:[%s4522_s3 + $0x8] sm:$0xff]  }
 0x477   :  { %v2788_v61 = vpop.f32.mrb[8].mxu1  ;;  %v3141_v19 = vpop.eup %3140  ;;  %3160 = vrcp.f32 %v3952_v43 }
 0x478   :  { %v4028_v54 = vmul.f32 %v3133_v44, %v2788_v61  ;;  %v626_v60 = vpop.f32.mrb[9].mxu1  ;;  %1302 = vadd.xlane.f32.xlu1 %v1301_v39  ;;  %v1316_v44 = vsel %vm495_vm2, %v3973_v6, 0.0  ;;  %v3143_v45 = vpop.eup %3142  ;;  %3162 = vrcp.f32 %v3960_v47 }
 0x479   :  { %v4032_v62 = vmul.f32 %v3135_v52, %v626_v60  ;;  %1299 = vadd.xlane.f32.xlu0 %v1298_v48  ;;  %v2789_v29 = vpop.f32.mrb[10].mxu1  ;;  %v3145_v52 = vpop.eup %3144 }
 0x47a   :  { %v4034_v49 = vmul.f32 %v3137_v33, %v2789_v29  ;;  %v629_v8 = vpop.f32.mrb[11].mxu1  ;;  %v3147_v33 = vpop.eup %3146 }
 0x47b   :  { %v4036_v51 = vmul.f32 %v3139_v20, %v629_v8  ;;  %v3149_v31 = vpop.eup %3148 }
 0x47c   :  { %v666_v23 = vpack.c.bf16 %v4034_v49, %v4028_v54  ;;  %1308 = vadd.xlane.f32.xlu1 %v1307_v41  ;;  %v3151_v0 = vpop.eup %3150  ;;  %v1619_v54 = vpop.permute.xlu1 %1618 }
 0x47d   :  { %v665_v55 = vpack.c.bf16 %v4036_v51, %v4032_v62  ;;  %1305 = vadd.xlane.f32.xlu0 %v1304_v26 }
 0x480   :  { %1314 = vadd.xlane.f32.xlu1 %v1313_v24 }
 0x481   :  { %1311 = vadd.xlane.f32.xlu0 %v1310_v1  ;;  %v3153_v1 = vpop.eup %3152 }
 0x484   :  { %1320 = vadd.xlane.f32.xlu1 %v1319_v28 }
 0x485   :  { %1317 = vadd.xlane.f32.xlu0 %v1316_v44 }
 0x487   :  { %v2792_v30 = vpop.f32.mrb[12].mxu1 }
 0x488   :  { %v663_v61 = vmul.f32 %v3141_v19, %v2792_v30  ;;  %v642_v39 = vpop.f32.mrb[13].mxu1  ;;  %v3155_v19 = vpop.eup %3154 }
 0x489   :  { %v661_v60 = vmul.f32 %v3143_v45, %v642_v39  ;;  %v2793_v48 = vpop.f32.mrb[14].mxu1  ;;  %v3157_v43 = vpop.eup %3156 }
 0x48a   :  { %v664_v29 = vmul.f32 %v3145_v52, %v2793_v48  ;;  %v645_v20 = vpop.f32.mrb[15].mxu1  ;;  %v3159_v47 = vpop.eup %3158 }
 0x48b   :  { %v662_v8 = vmul.f32 %v3147_v33, %v645_v20  ;;  %v3161_v33 = vpop.eup %3160 }
 0x48c   :  { %v668_v16 = vpack.c.bf16 %v664_v29, %v663_v61 }
 0x48d   :  { %v667_v27 = vpack.c.bf16 %v662_v8, %v661_v60  ;;  %v3163_v8 = vpop.eup %3162 }
 0x48f   :  { %v2820_v41 = vpop.f32.mrb[16].mxu1 }
 0x490   :  { %v953_v26 = vmul.f32 %v3149_v31, %v2820_v41  ;;  %v920_v24 = vpop.f32.mrb[17].mxu1 }
 0x491   :  { %v951_v28 = vmul.f32 %v3151_v0, %v920_v24  ;;  %v2821_v44 = vpop.f32.mrb[18].mxu1 }
 0x492   :  { %v954_v30 = vmul.f32 %v3153_v1, %v2821_v44  ;;  %v923_v45 = vpop.f32.mrb[19].mxu1  ;;  %v3296_v1 = vld [vmem:[%s4519_s0 + $0x30] sm:$0xff]  ;;  %v3297_v44 = vld [vmem:[%s4519_s0 + $0x20] sm:$0xff] }
 0x493   :  { %v952_v61 = vmul.f32 %v3155_v19, %v923_v45 }
 0x494   :  { %v960_v17 = vpack.c.bf16 %v954_v30, %v953_v26 }
 0x495   :  { %v959_v39 = vpack.c.bf16 %v952_v61, %v951_v28 }
 0x497   :  { %v2824_v52 = vpop.f32.mrb[20].mxu1  ;;  %2830 = vmatprep.mubr.msk.bf16.mxu1 %vm405_vm1, %v959_v39  ;;  %v3298_v39 = vld [vmem:[%s4519_s0 + $0x38] sm:$0xff] }
 0x498   :  { %v957_v60 = vmul.f32 %v3157_v43, %v2824_v52  ;;  %v936_v48 = vpop.f32.mrb[21].mxu1  ;;  %2831 = vmatmul.mubr.msk.bf16.vlgmr.msra.gmra.mrb[24].mxu1 %vm405_vm1, %v960_v17  ;;  %v3299_v52 = vld [vmem:[%s4519_s0 + $0x28] sm:$0xff] }
 0x499   :  { %v955_v29 = vmul.f32 %v3159_v47, %v936_v48  ;;  %2839 = vmatpush3.bf16.msra.mxu1 %v3931_v14  ;;  %v2825_v20 = vpop.f32.mrb[22].mxu1 }
 0x49a   :  { %v958_v31 = vmul.f32 %v3161_v33, %v2825_v20  ;;  %v939_v41 = vpop.f32.mrb[23].mxu1  ;;  %2840 = vmatprep.subr.bf16.mxu1 %v4069_v2 }
 0x49b   :  { %v956_v0 = vmul.f32 %v3163_v8, %v939_v41 }
 0x49c   :  { %v962_v26 = vpack.c.bf16 %v958_v31, %v957_v60 }
 0x49d   :  { %v961_v24 = vpack.c.bf16 %v956_v0, %v955_v29  ;;  %2841 = vmatpush3.bf16.msra.mxu1 %v4069_v2 }
 0x49e   :  { %2866 = vmatprep.subr.bf16.mxu1 %v3582_v15 }
 0x49f   :  { %2834 = vmatprep.mubr.msk.bf16.mxu1 %vm405_vm1, %v961_v24 }
 0x4a0   :  { %2835 = vmatmul.mubr.msk.bf16.gmra.mrb[28].mxu1 %vm405_vm1, %v962_v26 }
 0x4a1   :  { %2842 = vmatprep.mubr.msk.bf16.mxu1 %vm405_vm1, %v665_v55 }
 0x4a8   :  { %2843 = vmatmul.mubr.msk.bf16.vlgmr.msra.gmra.mrb[24].mxu1 %vm405_vm1, %v666_v23 }
 0x4a9   :  { %2867 = vmatpush3.bf16.msra.mxu1 %v3582_v15  ;;  %2846 = vmatprep.mubr.msk.bf16.mxu1 %vm405_vm1, %v667_v27  ;;  %v1617_v15 = vpop.permute.xlu0 %1616 }
 0x4aa   :  { %2868 = vmatprep.subr.bf16.mxu1 %v3593_v21 }
 0x4ad   :  { %2869 = vmatpush3.bf16.msra.mxu1 %v3593_v21  ;;  %v1621_v21 = vpop.permute.xlu1 %1620 }
 0x4ae   :  { %2870 = vmatprep.subr.bf16.mxu1 %v3605_v32 }
 0x4b0   :  { %2847 = vmatmul.mubr.msk.bf16.gmra.mrb[28].mxu1 %vm405_vm1, %v668_v16 }
 0x4b1   :  { %2871 = vmatpush3.bf16.msra.mxu1 %v3605_v32  ;;  %2874 = vmatprep.mubr.msk.bf16.mxu1 %vm495_vm2, %v1330_v56  ;;  %v1623_v32 = vpop.permute.xlu1 %1622 }
 0x4b2   :  { %2872 = vmatprep.subr.bf16.mxu1 %v3625_v38 }
 0x4b5   :  { %2873 = vmatpush3.bf16.msra.mxu1 %v3625_v38 }
 0x4b6   :  { %2898 = vmatprep.subr.bf16.mxu1 %v1617_v15 }
 0x4b8   :  { %2875 = vmatmul.mubr.msk.bf16.vlgmr.msra.gmra.mrb[32].mxu1 %vm495_vm2, %v1331_v5 }
 0x4b9   :  { %2899 = vmatpush3.bf16.msra.mxu1 %v1617_v15  ;;  %2878 = vmatprep.mubr.msk.bf16.mxu1 %vm495_vm2, %v1332_v13 }
 0x4ba   :  { %2900 = vmatprep.subr.bf16.mxu1 %v1619_v54 }
 0x4bd   :  { %2901 = vmatpush3.bf16.msra.mxu1 %v1619_v54 }
 0x4be   :  { %2902 = vmatprep.subr.bf16.mxu1 %v1621_v21 }
 0x4c0   :  { %2879 = vmatmul.mubr.msk.bf16.gmra.mrb[36].mxu1 %vm495_vm2, %v1333_v58  ;;  %v3292_v58 = vld [vmem:[%s4519_s0 + $0x10] sm:$0xff] }
 0x4c1   :  { %2903 = vmatpush3.bf16.msra.mxu1 %v1621_v21  ;;  %2906 = vmatprep.mubr.msk.bf16.mxu1 %vm495_vm2, %v1608_v9 }
 0x4c2   :  { %2904 = vmatprep.subr.bf16.mxu1 %v1623_v32 }
 0x4c5   :  { %2905 = vmatpush3.bf16.msra.mxu1 %v1623_v32 }
 0x4c6   :  { %2914 = vmatprep.subr.bf16.mxu1 %v3917_v22 }
 0x4c8   :  { %2907 = vmatmul.mubr.msk.bf16.vlgmr.msra.gmra.mrb[40].mxu1 %vm495_vm2, %v1609_v42  ;;  %v3294_v42 = vld [vmem:[%s4519_s0 + $0x18] sm:$0xff] }
 0x4c9   :  { %2910 = vmatprep.mubr.msk.bf16.mxu1 %vm495_vm2, %v1610_v63  ;;  %2915 = vmatpush3.bf16.msra.mxu1 %v3917_v22 }
 0x4ca   :  { %2916 = vmatprep.subr.bf16.mxu1 %v3924_v25 }
 0x4cd   :  { %2917 = vmatpush3.bf16.msra.mxu1 %v3924_v25 }
 0x4ce   :  { %2926 = vmatprep.subr.bf16.mxu1 %v3931_v14 }
 0x4d0   :  { %2911 = vmatmul.mubr.msk.bf16.gmra.mrb[44].mxu1 %vm495_vm2, %v1611_v36 }
 0x4f1   :  { %v4139_v5 = vpop.xlane.xlu1 %1580 }
 0x4f2   :  { %v4133_v38 = vpop.xlane.xlu0 %1577 }
 0x4f6   :  { %v4135_v40 = vpop.xlane.xlu0 %1583 }
 0x4fa   :  { %v4137_v4 = vpop.xlane.xlu0 %1586 }
 0x4fd   :  { %v4141_v10 = vpop.xlane.xlu1 %1592 }
 0x4fe   :  { %v4143_v18 = vpop.xlane.xlu0 %1589 }
 0x501   :  { %v4145_v56 = vpop.xlane.xlu1 %1598 }
 0x502   :  { %v4147_v11 = vpop.xlane.xlu0 %1595 }
 0x505   :  { %v1303_v12 = vpop.xlane.xlu1 %1302 }
 0x506   :  { %v1300_v13 = vpop.xlane.xlu0 %1299  ;;  %3164 = vrcp.f32 %v1303_v12 }
 0x509   :  { %v1309_v22 = vpop.xlane.xlu1 %1308 }
 0x50a   :  { %v1306_v6 = vpop.xlane.xlu0 %1305  ;;  %3166 = vrcp.f32 %v1309_v22 }
 0x50b   :  { %3168 = vrcp.f32 %v1306_v6 }
 0x50c   :  { %3170 = vrcp.f32 %v1300_v13 }
 0x50d   :  { %v1315_v3 = vpop.xlane.xlu1 %1314 }
 0x50e   :  { %v1312_v51 = vpop.xlane.xlu0 %1311  ;;  %3172 = vrcp.f32 %v1315_v3 }
 0x510   :  { %v3165_v31 = vpop.eup %3164 }
 0x511   :  { %v1321_v17 = vpop.xlane.xlu1 %1320 }
 0x512   :  { %v1318_v33 = vpop.xlane.xlu0 %1317  ;;  %3174 = vrcp.f32 %v1321_v17 }
 0x513   :  { %3176 = vrcp.f32 %v1318_v33 }
 0x514   :  { %v3167_v24 = vpop.eup %3166  ;;  %3178 = vrcp.f32 %v1312_v51 }
 0x515   :  { %v3169_v54 = vpop.eup %3168  ;;  %3180 = vrcp.f32 %v4139_v5 }
 0x516   :  { %v3171_v12 = vpop.eup %3170  ;;  %3182 = vrcp.f32 %v4135_v40 }
 0x517   :  { %3184 = vrcp.f32 %v4137_v4 }
 0x518   :  { %3186 = vrcp.f32 %v4133_v38  ;;  %v3021_v38 = vld [vmem:[%s4523_s5 + $0x4] ss:$8 sps:$4 sm:$0xff]  }
 0x519   :  { %3188 = vrcp.f32 %v4141_v10  ;;  %2106 = vmatprep.subr.bf16.mxu0 %v3021_v38 }
 0x51a   :  { %3190 = vrcp.f32 %v4145_v56 }
 0x51b   :  { %3192 = vrcp.f32 %v4147_v11  ;;  %v3024_v11 = vld [vmem:[%s4523_s5 + $0x14] ss:$8 sps:$4 sm:$0xff]  }
 0x51c   :  { %3194 = vrcp.f32 %v4143_v18 }
 0x57b   :  { %v2844_v25 = vpop.f32.mrb[24].mxu1 }
 0x57c   :  { %v1110_v59 = vpop.f32.mrb[25].mxu1  ;;  %v4152_v35 = vadd.f32 %v3292_v58, %v2844_v25 }
 0x57d   :  { %v4157_v9 = vadd.f32 %v3293_v34, %v1110_v59  ;;  %v2845_v50 = vpop.f32.mrb[26].mxu1 }
 0x57e   :  { %v1113_v57 = vpop.f32.mrb[27].mxu1  ;;  %v4162_v7 = vadd.f32 %v3294_v42, %v2845_v50  ;;  %v1890_v49 = vmul.f32 %v4152_v35, %v4152_v35 }
 0x57f   :  { %v4167_v63 = vadd.f32 %v3295_v46, %v1113_v57  ;;  %v1888_v37 = vmul.f32 %v4157_v9, %v4157_v9  ;;  %v3173_v57 = vpop.eup %3172 }
 0x580   :  { %v1891_v16 = vmul.f32 %v4162_v7, %v4162_v7  ;;  %v1910_v45 = vsel %vm60_vm0, %v1890_v49, 0.0  ;;  %v3175_v46 = vpop.eup %3174 }
 0x581   :  { %v1904_v36 = vsel %vm60_vm0, %v1888_v37, 0.0  ;;  %v1889_v62 = vmul.f32 %v4167_v63, %v4167_v63  ;;  %v3177_v3 = vpop.eup %3176 }
 0x582   :  { %1905 = vadd.xlane.f32.xlu0 %v1904_v36  ;;  %v1913_v60 = vsel %vm60_vm0, %v1891_v16, 0.0 }
 0x583   :  { %v2848_v23 = vpop.f32.mrb[28].mxu1  ;;  %v1907_v55 = vsel %vm60_vm0, %v1889_v62, 0.0  ;;  %v3179_v62 = vpop.eup %3178 }
 0x584   :  { %1908 = vadd.xlane.f32.xlu1 %v1907_v55  ;;  %v1126_v27 = vpop.f32.mrb[29].mxu1  ;;  %v4182_v28 = vadd.f32 %v3296_v1, %v2848_v23  ;;  %v3181_v4 = vpop.eup %3180  ;;  %v3019_v1 = vld [vmem:[%s4523_s5] ss:$8 sps:$4 sm:$0xff]  }
 0x585   :  { %v4187_v19 = vadd.f32 %v3297_v44, %v1126_v27  ;;  %v2849_v30 = vpop.f32.mrb[30].mxu1  ;;  %v3183_v44 = vpop.eup %3182  ;;  %2107 = vmatpush1.bf16.msra.mxu0 %v3019_v1 }
 0x586   :  { %v1129_v61 = vpop.f32.mrb[31].mxu1  ;;  %1911 = vadd.xlane.f32.xlu0 %v1910_v45  ;;  %v4193_v43 = vadd.f32 %v3298_v39, %v2849_v30  ;;  %v1894_v8 = vmul.f32 %v4182_v28, %v4182_v28  ;;  %v3185_v10 = vpop.eup %3184  ;;  %2108 = vmatprep.subr.bf16.mxu0 %v3024_v11 }
 0x587   :  { %v4198_v47 = vadd.f32 %v3299_v52, %v1129_v61  ;;  %v1892_v48 = vmul.f32 %v4187_v19, %v4187_v19  ;;  %v3187_v56 = vpop.eup %3186 }
 0x588   :  { %1914 = vadd.xlane.f32.xlu1 %v1913_v60  ;;  %v1895_v26 = vmul.f32 %v4193_v43, %v4193_v43  ;;  %v1922_v32 = vsel %vm60_vm0, %v1894_v8, 0.0 }
 0x589   :  { %v1916_v29 = vsel %vm60_vm0, %v1892_v48, 0.0  ;;  %v1893_v20 = vmul.f32 %v4198_v47, %v4198_v47  ;;  %v3022_v48 = vld [vmem:[%s4523_s5 + $0x10] ss:$8 sps:$4 sm:$0xff]  }
 0x58a   :  { %1917 = vadd.xlane.f32.xlu0 %v1916_v29  ;;  %v1925_v58 = vsel %vm60_vm0, %v1895_v26, 0.0  ;;  %2109 = vmatpush1.bf16.msra.mxu0 %v3022_v48  ;;  %v3027_v29 = vld [vmem:[%s4523_s5 + $0x24] ss:$8 sps:$4 sm:$0xff]  }
 0x58b   :  { %v2876_v41 = vpop.f32.mrb[32].mxu1  ;;  %v1919_v0 = vsel %vm60_vm0, %v1893_v20, 0.0  ;;  %v3189_v20 = vpop.eup %3188  ;;  %2110 = vmatprep.subr.bf16.mxu0 %v3027_v29 }
 0x58c   :  { %1920 = vadd.xlane.f32.xlu1 %v1919_v0  ;;  %v1380_v15 = vpop.f32.mrb[33].mxu1  ;;  %v4212_v13 = vmul.f32 %v3169_v54, %v2876_v41  ;;  %v3191_v41 = vpop.eup %3190 }
 0x58d   :  { %v2877_v21 = vpop.f32.mrb[34].mxu1  ;;  %v4216_v6 = vmul.f32 %v3171_v12, %v1380_v15  ;;  %v3193_v26 = vpop.eup %3192 }
 0x58e   :  { %v4214_v22 = vmul.f32 %v3167_v24, %v2877_v21  ;;  %v1383_v25 = vpop.f32.mrb[35].mxu1  ;;  %1923 = vadd.xlane.f32.xlu0 %v1922_v32  ;;  %v3195_v15 = vpop.eup %3194 }
 0x58f   :  { %v4218_v59 = vmul.f32 %v3165_v31, %v1383_v25  ;;  %v3025_v31 = vld [vmem:[%s4523_s5 + $0x20] ss:$8 sps:$4 sm:$0xff]  }
 0x590   :  { %v1420_v34 = vpack.c.bf16 %v4214_v22, %v4212_v13  ;;  %1926 = vadd.xlane.f32.xlu1 %v1925_v58  ;;  %2111 = vmatpush1.bf16.msra.mxu0 %v3025_v31 }
 0x591   :  { %v1419_v50 = vpack.c.bf16 %v4218_v59, %v4216_v6 }
 0x593   :  { %v2880_v42 = vpop.f32.mrb[36].mxu1 }
 0x594   :  { %v1396_v37 = vpop.f32.mrb[37].mxu1  ;;  %v4229_v49 = vmul.f32 %v3177_v3, %v2880_v42 }
 0x595   :  { %v2881_v36 = vpop.f32.mrb[38].mxu1  ;;  %v1415_v23 = vmul.f32 %v3179_v62, %v1396_v37 }
 0x596   :  { %v1418_v51 = vmul.f32 %v3175_v46, %v2881_v36  ;;  %v1399_v5 = vpop.f32.mrb[39].mxu1 }
 0x597   :  { %v1416_v55 = vmul.f32 %v3173_v57, %v1399_v5 }
 0x598   :  { %v1422_v16 = vpack.c.bf16 %v1418_v51, %v4229_v49 }
 0x599   :  { %v1421_v40 = vpack.c.bf16 %v1416_v55, %v1415_v23 }
 0x59b   :  { %v2908_v27 = vpop.f32.mrb[40].mxu1 }
 0x59c   :  { %v1674_v30 = vpop.f32.mrb[41].mxu1  ;;  %v1707_v61 = vmul.f32 %v3183_v44, %v2908_v27  ;;  %v4275_v27 = vld [vmem:[%s4524_s4] ss:$0 sm:$0xff] }
 0x59d   :  { %v2909_v45 = vpop.f32.mrb[42].mxu1  ;;  %v1705_v52 = vmul.f32 %v3187_v56, %v1674_v30 }
 0x59e   :  { %v1708_v17 = vmul.f32 %v3185_v10, %v2909_v45  ;;  %v1677_v39 = vpop.f32.mrb[43].mxu1 }
 0x59f   :  { %v1706_v60 = vmul.f32 %v3181_v4, %v1677_v39 }
 0x5a0   :  { %v1714_v18 = vpack.c.bf16 %v1708_v17, %v1707_v61 }
 0x5a1   :  { %v1713_v33 = vpack.c.bf16 %v1706_v60, %v1705_v52 }
 0x5a3   :  { %v2912_v8 = vpop.f32.mrb[44].mxu1  ;;  %2918 = vmatprep.mubr.msk.bf16.mxu1 %vm405_vm1, %v1713_v33 }
 0x5a4   :  { %v1690_v0 = vpop.f32.mrb[45].mxu1  ;;  %2919 = vmatmul.mubr.msk.bf16.vlgmr.msra.gmra.mrb[48].mxu1 %vm405_vm1, %v1714_v18  ;;  %v1711_v54 = vmul.f32 %v3193_v26, %v2912_v8 }
 0x5a5   :  { %v2913_v24 = vpop.f32.mrb[46].mxu1  ;;  %2927 = vmatpush3.bf16.msra.mxu1 %v3931_v14  ;;  %v1709_v12 = vmul.f32 %v3195_v15, %v1690_v0 }
 0x5a6   :  { %v1712_v21 = vmul.f32 %v3191_v41, %v2913_v24  ;;  %v1693_v32 = vpop.f32.mrb[47].mxu1  ;;  %2928 = vmatprep.subr.bf16.mxu1 %v4069_v2 }
 0x5a7   :  { %v1710_v25 = vmul.f32 %v3189_v20, %v1693_v32 }
 0x5a8   :  { %v1716_v58 = vpack.c.bf16 %v1712_v21, %v1711_v54 }
 0x5a9   :  { %v1715_v57 = vpack.c.bf16 %v1710_v25, %v1709_v12  ;;  %2929 = vmatpush3.bf16.msra.mxu1 %v4069_v2 }
 0x5ab   :  { %2922 = vmatprep.mubr.msk.bf16.mxu1 %vm405_vm1, %v1715_v57 }
 0x5ac   :  { %2923 = vmatmul.mubr.msk.bf16.gmra.mrb[52].mxu1 %vm405_vm1, %v1716_v58  ;;  %v3028_v58 = vld [vmem:[%s4525_s6] sm:$0xff]  }
 0x5ad   :  { %2930 = vmatprep.mubr.msk.bf16.mxu1 %vm405_vm1, %v1419_v50  ;;  %2938 = vmatprep.subr.bf16.mxu1 %v3028_v58 }
 0x5b4   :  { %2931 = vmatmul.mubr.msk.bf16.vlgmr.msra.gmra.mrb[48].mxu1 %vm405_vm1, %v1420_v34 }
 0x5b5   :  { %2934 = vmatprep.mubr.msk.bf16.mxu1 %vm405_vm1, %v1421_v40  ;;  %2939 = vmatpush3.bf16.msra.mxu1 %v3028_v58 }
 0x5bc   :  { %2935 = vmatmul.mubr.msk.bf16.gmra.mrb[52].mxu1 %vm405_vm1, %v1422_v16 }
 0x60f   :  { %v1906_v14 = vpop.xlane.xlu0 %1905 }
 0x610   :  { %v1952_v2 = vmul.f32 0.020833334, %v1906_v14 }
 0x611   :  { %v1909_v42 = vpop.xlane.xlu1 %1908 }
 0x612   :  { %v1968_v46 = vadd.f32 1e-06, %v1952_v2  ;;  %v1953_v37 = vmul.f32 0.020833334, %v1909_v42  ;;  %v3029_v2 = vld [vmem:[%s4525_s6 + $0x8] sm:$0xff]   ;;  %v3300_v42 = vld [vmem:[%s4519_s0 + $0x50] sm:$0xff] }
 0x613   :  { %v1912_v3 = vpop.xlane.xlu0 %1911  ;;  %2940 = vmatprep.subr.bf16.mxu1 %v3029_v2 }
 0x614   :  { %3196 = vrsqrt.f32 %v1968_v46  ;;  %v1969_v36 = vadd.f32 1e-06, %v1953_v37  ;;  %v1954_v6 = vmul.f32 0.020833334, %v1912_v3  ;;  %v3301_v37 = vld [vmem:[%s4519_s0 + $0x40] sm:$0xff]  ;;  %2941 = vmatpush3.bf16.msra.mxu1 %v3029_v2 }
 0x615   :  { %v1915_v59 = vpop.xlane.xlu1 %1914 }
 0x616   :  { %3198 = vrsqrt.f32 %v1969_v36  ;;  %v1970_v50 = vadd.f32 1e-06, %v1954_v6  ;;  %v1955_v62 = vmul.f32 0.020833334, %v1915_v59  ;;  %v3302_v59 = vld [vmem:[%s4519_s0 + $0x58] sm:$0xff] }
 0x617   :  { %v1918_v13 = vpop.xlane.xlu0 %1917 }
 0x618   :  { %v1971_v22 = vadd.f32 1e-06, %v1955_v62  ;;  %3200 = vrsqrt.f32 %v1970_v50  ;;  %v1956_v49 = vmul.f32 0.020833334, %v1918_v13  ;;  %v3303_v62 = vld [vmem:[%s4519_s0 + $0x48] sm:$0xff] }
 0x619   :  { %v1921_v34 = vpop.xlane.xlu1 %1920 }
 0x61a   :  { %3202 = vrsqrt.f32 %v1971_v22  ;;  %v1957_v51 = vmul.f32 0.020833334, %v1921_v34  ;;  %v1972_v16 = vadd.f32 1e-06, %v1956_v49  ;;  %v3030_v34 = vld [vmem:[%s4525_s6 + $0x10] sm:$0xff]  }
 0x61b   :  { %v1924_v38 = vpop.xlane.xlu0 %1923  ;;  %2942 = vmatprep.subr.bf16.mxu1 %v3030_v34 }
 0x61c   :  { %v1973_v5 = vadd.f32 1e-06, %v1957_v51  ;;  %v1958_v30 = vmul.f32 0.020833334, %v1924_v38  ;;  %2943 = vmatpush3.bf16.msra.mxu1 %v3030_v34  ;;  %v3031_v38 = vld [vmem:[%s4525_s6 + $0x18] sm:$0xff]  }
 0x61d   :  { %v1927_v23 = vpop.xlane.xlu1 %1926  ;;  %2944 = vmatprep.subr.bf16.mxu1 %v3031_v38 }
 0x61e   :  { %v3197_v55 = vpop.eup %3196  ;;  %3204 = vrsqrt.f32 %v1973_v5  ;;  %v1959_v1 = vmul.f32 0.020833334, %v1927_v23  ;;  %v1974_v52 = vadd.f32 1e-06, %v1958_v30 }
 0x61f   :  { %v2000_v40 = vmul.f32 %v3197_v55, %v4157_v9  ;;  %3206 = vrsqrt.f32 %v1972_v16 }
 0x620   :  { %v3199_v4 = vpop.eup %3198  ;;  %v1975_v17 = vadd.f32 1e-06, %v1959_v1  ;;  %2945 = vmatpush3.bf16.msra.mxu1 %v3031_v38 }
 0x621   :  { %v2001_v44 = vmul.f32 %v3199_v4, %v4167_v63  ;;  %v2022_v45 = vmul.f32 %v4275_v27, %v2000_v40  ;;  %v3304_v4 = vld [vmem:[%s4519_s0 + $0x70] sm:$0xff] }
 0x622   :  { %v3201_v10 = vpop.eup %3200  ;;  %3208 = vrsqrt.f32 %v1975_v17 }
 0x623   :  { %v2023_v56 = vmul.f32 %v4275_v27, %v2001_v44  ;;  %v2002_v60 = vmul.f32 %v3201_v10, %v4152_v35  ;;  %3210 = vrsqrt.f32 %v1974_v52  ;;  %v3305_v44 = vld [vmem:[%s4519_s0 + $0x60] sm:$0xff] }
 0x624   :  { %v3203_v61 = vpop.eup %3202 }
 0x625   :  { %v2038_v39 = vpack.c.bf16 %v2023_v56, %v2022_v45  ;;  %v2003_v11 = vmul.f32 %v3203_v61, %v4162_v7  ;;  %v2024_v33 = vmul.f32 %v4275_v27, %v2002_v60  ;;  %v3306_v61 = vld [vmem:[%s4519_s0 + $0x78] sm:$0xff] }
 0x627   :  { %2626 = vmatmul.mubr.msk.bf16.vlgmr.msra.gmra.mrb[56].mxu0 %vm60_vm0, %v2038_v39  ;;  %v2025_v48 = vmul.f32 %v4275_v27, %v2003_v11  ;;  %v3307_v39 = vld [vmem:[%s4519_s0 + $0x68] sm:$0xff] }
 0x628   :  { %2148 = vmatprep.mubr.bf16.mxu0 %v3308_v53  ;;  %v3205_v18 = vpop.eup %3204 }
 0x629   :  { %v3207_v29 = vpop.eup %3206  ;;  %v2039_v20 = vpack.c.bf16 %v2025_v48, %v2024_v33  ;;  %v2005_v8 = vmul.f32 %v3205_v18, %v4198_v47  ;;  %v3032_v48 = vld [vmem:[%s4525_s6 + $0x20] sm:$0xff]  }
 0x62a   :  { %v2004_v31 = vmul.f32 %v3207_v29, %v4187_v19  ;;  %2946 = vmatprep.subr.bf16.mxu1 %v3032_v48 }
 0x62b   :  { %v2027_v41 = vmul.f32 %v4275_v27, %v2005_v8  ;;  %2947 = vmatpush3.bf16.msra.mxu1 %v3032_v48 }
 0x62c   :  { %v3209_v0 = vpop.eup %3208  ;;  %v2026_v26 = vmul.f32 %v4275_v27, %v2004_v31  ;;  %v3033_v31 = vld [vmem:[%s4525_s6 + $0x28] sm:$0xff]  }
 0x62d   :  { %v3211_v24 = vpop.eup %3210  ;;  %v2007_v54 = vmul.f32 %v3209_v0, %v4193_v43  ;;  %2948 = vmatprep.subr.bf16.mxu1 %v3033_v31 }
 0x62e   :  { %v2040_v15 = vpack.c.bf16 %v2027_v41, %v2026_v26  ;;  %v2006_v21 = vmul.f32 %v3211_v24, %v4182_v28  ;;  %v3034_v26 = vld [vmem:[%s4525_s6 + $0x30] sm:$0xff]   ;;  %v3035_v24 = vld [vmem:[%s4525_s6 + $0x38] sm:$0xff]  }
 0x62f   :  { %2627 = vmatmul.mubr.msk.bf16.gmra.mrb[60].mxu0 %vm60_vm0, %v2039_v20  ;;  %v2029_v32 = vmul.f32 %v4275_v27, %v2007_v54  ;;  %2949 = vmatpush3.bf16.msra.mxu1 %v3033_v31 }
 0x630   :  { %2158 = vmatprep.mubr.bf16.mxu0 %v3308_v53  ;;  %v2028_v12 = vmul.f32 %v4275_v27, %v2006_v21  ;;  %2950 = vmatprep.subr.bf16.mxu1 %v3034_v26 }
 0x632   :  { %v2041_v25 = vpack.c.bf16 %v2029_v32, %v2028_v12 }
 0x633   :  { %2951 = vmatpush3.bf16.msra.mxu1 %v3034_v26 }
 0x634   :  { %2952 = vmatprep.subr.bf16.mxu1 %v3035_v24 }
 0x637   :  { %2628 = vmatmul.mubr.msk.bf16.gmra.mrb[64].mxu0 %vm60_vm0, %v2040_v15  ;;  %2953 = vmatpush3.bf16.msra.mxu1 %v3035_v24 }
 0x638   :  { %2168 = vmatprep.mubr.bf16.mxu0 %v3308_v53 }
 0x63f   :  { %2629 = vmatmul.mubr.msk.bf16.gmra.mrb[68].mxu0 %vm60_vm0, %v2041_v25 }
 0x640   :  { %2178 = vmatprep.mubr.bf16.mxu0 %v3308_v53 }
 0x687   :  { %v2932_v57 = vpop.f32.mrb[48].mxu1 }
 0x688   :  { %v1840_v14 = vpop.f32.mrb[49].mxu1  ;;  %v4309_v46 = vadd.f32 %v3300_v42, %v2932_v57 }
 0x689   :  { %v4314_v3 = vadd.f32 %v3301_v37, %v1840_v14  ;;  %v2933_v36 = vpop.f32.mrb[50].mxu1 }
 0x68a   :  { %v1843_v6 = vpop.f32.mrb[51].mxu1  ;;  %v4319_v50 = vadd.f32 %v3302_v59, %v2933_v36  ;;  %v1898_v5 = vmul.f32 %v4309_v46, %v4309_v46 }
 0x68b   :  { %v4324_v13 = vadd.f32 %v3303_v62, %v1843_v6  ;;  %v1896_v22 = vmul.f32 %v4314_v3, %v4314_v3 }
 0x68c   :  { %v1899_v16 = vmul.f32 %v4319_v50, %v4319_v50  ;;  %v1934_v45 = vsel %vm60_vm0, %v1898_v5, 0.0 }
 0x68d   :  { %v1928_v49 = vsel %vm60_vm0, %v1896_v22, 0.0  ;;  %v1897_v51 = vmul.f32 %v4324_v13, %v4324_v13 }
 0x68e   :  { %1929 = vadd.xlane.f32.xlu0 %v1928_v49  ;;  %v1937_v52 = vsel %vm60_vm0, %v1899_v16, 0.0 }
 0x68f   :  { %v2936_v23 = vpop.f32.mrb[52].mxu1  ;;  %v1931_v55 = vsel %vm60_vm0, %v1897_v51, 0.0 }
 0x690   :  { %1932 = vadd.xlane.f32.xlu1 %v1931_v55  ;;  %v1856_v40 = vpop.f32.mrb[53].mxu1  ;;  %v4345_v1 = vadd.f32 %v3304_v4, %v2936_v23 }
 0x691   :  { %v4350_v30 = vadd.f32 %v3305_v44, %v1856_v40  ;;  %v2937_v10 = vpop.f32.mrb[54].mxu1 }
 0x692   :  { %1935 = vadd.xlane.f32.xlu0 %v1934_v45  ;;  %v1859_v56 = vpop.f32.mrb[55].mxu1  ;;  %v4356_v17 = vadd.f32 %v3306_v61, %v2937_v10  ;;  %v1902_v29 = vmul.f32 %v4345_v1, %v4345_v1 }
 0x693   :  { %v4361_v11 = vadd.f32 %v3307_v39, %v1859_v56  ;;  %v1900_v60 = vmul.f32 %v4350_v30, %v4350_v30 }
 0x694   :  { %1938 = vadd.xlane.f32.xlu1 %v1937_v52  ;;  %v1903_v8 = vmul.f32 %v4356_v17, %v4356_v17  ;;  %v1946_v41 = vsel %vm60_vm0, %v1902_v29, 0.0 }
 0x695   :  { %v1940_v18 = vsel %vm60_vm0, %v1900_v60, 0.0  ;;  %v1901_v33 = vmul.f32 %v4361_v11, %v4361_v11 }
 0x696   :  { %1941 = vadd.xlane.f32.xlu0 %v1940_v18  ;;  %v1949_v0 = vsel %vm60_vm0, %v1903_v8, 0.0 }
 0x697   :  { %v1943_v20 = vsel %vm60_vm0, %v1901_v33, 0.0 }
 0x698   :  { %1944 = vadd.xlane.f32.xlu1 %v1943_v20 }
 0x69a   :  { %1947 = vadd.xlane.f32.xlu0 %v1946_v41 }
 0x69c   :  { %1950 = vadd.xlane.f32.xlu1 %v1949_v0 }
 0x6fa   :  { %v2140_v15 = vpop.f32.mrb[56].mxu0 }
 0x6fb   :  { %v2634_v54 = vmul.f32 -1.442695, %v2140_v15  ;;  %v2142_v21 = vpop.f32.mrb[57].mxu0 }
 0x6fc   :  { %v2144_v32 = vpop.f32.mrb[58].mxu0 }
 0x6fd   :  { %3212 = vpow2.f32 %v2634_v54  ;;  %v2635_v12 = vmul.f32 -1.442695, %v2144_v32  ;;  %v2146_v25 = vpop.f32.mrb[59].mxu0 }
 0x6ff   :  { %3214 = vpow2.f32 %v2635_v12 }
 0x702   :  { %v2150_v58 = vpop.f32.mrb[60].mxu0 }
 0x703   :  { %v2636_v57 = vmul.f32 -1.442695, %v2150_v58  ;;  %v2152_v14 = vpop.f32.mrb[61].mxu0 }
 0x704   :  { %v2154_v2 = vpop.f32.mrb[62].mxu0 }
 0x705   :  { %3216 = vpow2.f32 %v2636_v57  ;;  %v2637_v42 = vmul.f32 -1.442695, %v2154_v2  ;;  %v2156_v37 = vpop.f32.mrb[63].mxu0 }
 0x707   :  { %v3213_v36 = vpop.eup %3212  ;;  %3218 = vpow2.f32 %v2637_v42 }
 0x708   :  { %v2267_v6 = vadd.f32 1.0, %v3213_v36 }
 0x709   :  { %v3215_v59 = vpop.eup %3214 }
 0x70a   :  { %3220 = vrcp.f32 %v2267_v6  ;;  %v2268_v62 = vadd.f32 1.0, %v3215_v59  ;;  %v4388_v22 = vpop.f32.mrb[64].mxu0 }
 0x70b   :  { %v2638_v34 = vmul.f32 -1.442695, %v4388_v22  ;;  %v4391_v49 = vpop.f32.mrb[65].mxu0 }
 0x70c   :  { %3222 = vrcp.f32 %v2268_v62  ;;  %v4393_v51 = vpop.f32.mrb[66].mxu0 }
 0x70d   :  { %3224 = vpow2.f32 %v2638_v34  ;;  %v2639_v5 = vmul.f32 -1.442695, %v4393_v51  ;;  %v4396_v23 = vpop.f32.mrb[67].mxu0 }
 0x70f   :  { %v3217_v55 = vpop.eup %3216  ;;  %3226 = vpow2.f32 %v2639_v5 }
 0x710   :  { %v2269_v16 = vadd.f32 1.0, %v3217_v55 }
 0x711   :  { %v3219_v40 = vpop.eup %3218 }
 0x712   :  { %3228 = vrcp.f32 %v2269_v16  ;;  %v2270_v38 = vadd.f32 1.0, %v3219_v40  ;;  %v4398_v4 = vpop.f32.mrb[68].mxu0 }
 0x713   :  { %v2640_v44 = vmul.f32 -1.442695, %v4398_v4  ;;  %v4401_v10 = vpop.f32.mrb[69].mxu0 }
 0x714   :  { %v3221_v45 = vpop.eup %3220  ;;  %3230 = vrcp.f32 %v2270_v38  ;;  %v4403_v56 = vpop.f32.mrb[70].mxu0 }
 0x715   :  { %v2315_v61 = vmul.f32 %v3221_v45, %v2140_v15  ;;  %3232 = vpow2.f32 %v2640_v44  ;;  %v2641_v39 = vmul.f32 -1.442695, %v4403_v56  ;;  %v4406_v52 = vpop.f32.mrb[71].mxu0 }
 0x716   :  { %v3223_v60 = vpop.eup %3222 }
 0x717   :  { %v3225_v48 = vpop.eup %3224  ;;  %v2331_v18 = vmul.f32 %v2315_v61, %v2142_v21  ;;  %v2316_v33 = vmul.f32 %v3223_v60, %v2144_v32  ;;  %3234 = vpow2.f32 %v2641_v39 }
 0x718   :  { %v2271_v29 = vadd.f32 1.0, %v3225_v48 }
 0x719   :  { %v3227_v20 = vpop.eup %3226  ;;  %v2332_v8 = vmul.f32 %v2316_v33, %v2146_v25 }
 0x71a   :  { %3236 = vrcp.f32 %v2271_v29  ;;  %v2272_v31 = vadd.f32 1.0, %v3227_v20 }
 0x71b   :  { %v2347_v41 = vpack.c.bf16 %v2332_v8, %v2331_v18  ;;  %v1930_v0 = vpop.xlane.xlu0 %1929 }
 0x71c   :  { %v3229_v26 = vpop.eup %3228  ;;  %3238 = vrcp.f32 %v2272_v31  ;;  %v1960_v24 = vmul.f32 0.020833334, %v1930_v0 }
 0x71d   :  { %v2317_v15 = vmul.f32 %v3229_v26, %v2150_v58  ;;  %v1933_v54 = vpop.xlane.xlu1 %1932  ;;  %2954 = vmatprep.mubr.bf16.mxu1 %v2347_v41 }
 0x71e   :  { %v3231_v12 = vpop.eup %3230  ;;  %v1976_v57 = vadd.f32 1e-06, %v1960_v24  ;;  %v1961_v42 = vmul.f32 0.020833334, %v1933_v54 }
 0x71f   :  { %v3233_v36 = vpop.eup %3232  ;;  %v2333_v21 = vmul.f32 %v2317_v15, %v2152_v14  ;;  %v2318_v32 = vmul.f32 %v3231_v12, %v2154_v2  ;;  %v1936_v6 = vpop.xlane.xlu0 %1935 }
 0x720   :  { %v2273_v59 = vadd.f32 1.0, %v3233_v36  ;;  %3240 = vrsqrt.f32 %v1976_v57  ;;  %v1977_v25 = vadd.f32 1e-06, %v1961_v42  ;;  %v1962_v62 = vmul.f32 0.020833334, %v1936_v6 }
 0x721   :  { %v3235_v34 = vpop.eup %3234  ;;  %v2334_v5 = vmul.f32 %v2318_v32, %v2156_v37  ;;  %v1939_v55 = vpop.xlane.xlu1 %1938 }
 0x722   :  { %3242 = vrcp.f32 %v2273_v59  ;;  %v2274_v16 = vadd.f32 1.0, %v3235_v34  ;;  %v1963_v40 = vmul.f32 0.020833334, %v1939_v55  ;;  %v1978_v38 = vadd.f32 1e-06, %v1962_v62 }
 0x723   :  { %v2348_v58 = vpack.c.bf16 %v2334_v5, %v2333_v21  ;;  %3244 = vrsqrt.f32 %v1977_v25  ;;  %v1942_v61 = vpop.xlane.xlu0 %1941 }
 0x724   :  { %v3237_v44 = vpop.eup %3236  ;;  %3246 = vrcp.f32 %v2274_v16  ;;  %v1979_v45 = vadd.f32 1e-06, %v1963_v40  ;;  %v1964_v18 = vmul.f32 0.020833334, %v1942_v61 }
 0x725   :  { %v2319_v14 = vmul.f32 %v3237_v44, %v4388_v22  ;;  %v1945_v2 = vpop.xlane.xlu1 %1944  ;;  %2955 = vmatmul.mubr.bf16.vlgmr.msra.gmra.mrb[56].mxu1 %v2348_v58 }
 0x726   :  { %v3239_v39 = vpop.eup %3238  ;;  %3248 = vrsqrt.f32 %v1979_v45  ;;  %v1965_v60 = vmul.f32 0.020833334, %v1945_v2  ;;  %v1980_v41 = vadd.f32 1e-06, %v1964_v18 }
 0x727   :  { %v2335_v37 = vmul.f32 %v2319_v14, %v4391_v49  ;;  %v2320_v48 = vmul.f32 %v3239_v39, %v4393_v51  ;;  %3250 = vrsqrt.f32 %v1978_v38  ;;  %v1948_v22 = vpop.xlane.xlu0 %1947 }
 0x728   :  { %v1981_v29 = vadd.f32 1e-06, %v1965_v60  ;;  %v1966_v57 = vmul.f32 0.020833334, %v1948_v22 }
 0x729   :  { %v2336_v33 = vmul.f32 %v2320_v48, %v4396_v23  ;;  %v1951_v8 = vpop.xlane.xlu1 %1950 }
 0x72a   :  { %v3241_v20 = vpop.eup %3240  ;;  %3252 = vrsqrt.f32 %v1981_v29  ;;  %v1967_v49 = vmul.f32 0.020833334, %v1951_v8  ;;  %v1982_v34 = vadd.f32 1e-06, %v1966_v57 }
 0x72b   :  { %v2349_v31 = vpack.c.bf16 %v2336_v33, %v2335_v37  ;;  %v2008_v26 = vmul.f32 %v3241_v20, %v4314_v3  ;;  %3254 = vrsqrt.f32 %v1980_v41 }
 0x72c   :  { %v3243_v0 = vpop.eup %3242  ;;  %v1983_v6 = vadd.f32 1e-06, %v1967_v49 }
 0x72d   :  { %v3245_v24 = vpop.eup %3244  ;;  %v2321_v15 = vmul.f32 %v3243_v0, %v4398_v4  ;;  %2958 = vmatprep.mubr.bf16.mxu1 %v2349_v31  ;;  %v2030_v36 = vmul.f32 %v4275_v27, %v2008_v26 }
 0x72e   :  { %v3247_v51 = vpop.eup %3246  ;;  %v2009_v54 = vmul.f32 %v3245_v24, %v4324_v13  ;;  %3256 = vrsqrt.f32 %v1983_v6 }
 0x72f   :  { %v2337_v23 = vmul.f32 %v2321_v15, %v4401_v10  ;;  %v2322_v12 = vmul.f32 %v3247_v51, %v4403_v56  ;;  %3258 = vrsqrt.f32 %v1982_v34 }
 0x730   :  { %v3249_v42 = vpop.eup %3248  ;;  %v2031_v21 = vmul.f32 %v4275_v27, %v2009_v54 }
 0x731   :  { %v3251_v32 = vpop.eup %3250  ;;  %v2338_v4 = vmul.f32 %v2322_v12, %v4406_v52  ;;  %v2011_v25 = vmul.f32 %v3249_v42, %v4319_v50 }
 0x732   :  { %v2042_v59 = vpack.c.bf16 %v2031_v21, %v2030_v36  ;;  %v2010_v10 = vmul.f32 %v3251_v32, %v4309_v46 }
 0x733   :  { %v2350_v62 = vpack.c.bf16 %v2338_v4, %v2337_v23  ;;  %v2033_v56 = vmul.f32 %v4275_v27, %v2011_v25 }
 0x734   :  { %2630 = vmatmul.mubr.msk.bf16.gmra.mrb[72].mxu0 %vm60_vm0, %v2042_v59  ;;  %v3253_v5 = vpop.eup %3252  ;;  %v2032_v52 = vmul.f32 %v4275_v27, %v2010_v10 }
 0x735   :  { %2959 = vmatmul.mubr.bf16.gmra.mrb[60].mxu1 %v2350_v62  ;;  %2188 = vmatprep.mubr.bf16.mxu0 %v3308_v53  ;;  %v3255_v55 = vpop.eup %3254  ;;  %v2013_v40 = vmul.f32 %v3253_v5, %v4361_v11 }
 0x736   :  { %v2043_v16 = vpack.c.bf16 %v2033_v56, %v2032_v52  ;;  %v2012_v58 = vmul.f32 %v3255_v55, %v4350_v30 }
 0x737   :  { %v2035_v38 = vmul.f32 %v4275_v27, %v2013_v40 }
 0x738   :  { %v3257_v44 = vpop.eup %3256  ;;  %v2034_v45 = vmul.f32 %v4275_v27, %v2012_v58 }
 0x739   :  { %v3259_v61 = vpop.eup %3258  ;;  %v2015_v2 = vmul.f32 %v3257_v44, %v4356_v17 }
 0x73a   :  { %v2044_v14 = vpack.c.bf16 %v2035_v38, %v2034_v45  ;;  %v2014_v39 = vmul.f32 %v3259_v61, %v4345_v1 }
 0x73b   :  { %v2037_v60 = vmul.f32 %v4275_v27, %v2015_v2 }
 0x73c   :  { %2631 = vmatmul.mubr.msk.bf16.gmra.mrb[76].mxu0 %vm60_vm0, %v2043_v16  ;;  %v2036_v37 = vmul.f32 %v4275_v27, %v2014_v39 }
 0x73d   :  { %2198 = vmatprep.mubr.bf16.mxu0 %v3308_v53 }
 0x73e   :  { %v2045_v48 = vpack.c.bf16 %v2037_v60, %v2036_v37 }
 0x744   :  { %2632 = vmatmul.mubr.msk.bf16.gmra.mrb[80].mxu0 %vm60_vm0, %v2044_v14 }
 0x745   :  { %2208 = vmatprep.mubr.bf16.mxu0 %v3308_v53 }
 0x74c   :  { %2633 = vmatmul.mubr.msk.bf16.gmra.mrb[84].mxu0 %vm60_vm0, %v2045_v48 }
 0x7f8   :  { %v2956_v18 = vpop.f32.mrb[56].mxu1 }
 0x7f9   :  { %v2518_v33 = vadd.f32 %v2956_v18, %v4152_v35  ;;  %v2453_v29 = vpop.f32.mrb[57].mxu1 }
 0x7fa   :  { %v2516_v20 = vadd.f32 %v2453_v29, %v4157_v9  ;;  %v2957_v8 = vpop.f32.mrb[58].mxu1 }
 0x7fb   :  { %2534 = vst.msk [vmem:[%s4526_s7 + $0x10] sm:$0xff] %vm60_vm0, %v2518_v33  ;;  %v2519_v53 = vadd.f32 %v2957_v8, %v4162_v7  ;;  %v2456_v31 = vpop.f32.mrb[59].mxu1 }
 0x7fc   :  { %2532 = vst.msk [vmem:[%s4526_s7] sm:$0xff] %vm60_vm0, %v2516_v20  ;;  %v2517_v27 = vadd.f32 %v2456_v31, %v4167_v63 }
 0x7fd   :  { %2535 = vst.msk [vmem:[%s4526_s7 + $0x18] sm:$0xff] %vm60_vm0, %v2519_v53 }
 0x7fe   :  { %2533 = vst.msk [vmem:[%s4526_s7 + $0x8] sm:$0xff] %vm60_vm0, %v2517_v27 }
 0x807   :  { %v2180_v35 = vpop.f32.mrb[72].mxu0 }
 0x808   :  { %v2642_v9 = vmul.f32 -1.442695, %v2180_v35  ;;  %v2182_v7 = vpop.f32.mrb[73].mxu0  ;;  %v2960_v41 = vpop.f32.mrb[60].mxu1 }
 0x809   :  { %v2184_v0 = vpop.f32.mrb[74].mxu0  ;;  %v2522_v22 = vadd.f32 %v2960_v41, %v4182_v28  ;;  %v2469_v26 = vpop.f32.mrb[61].mxu1 }
 0x80a   :  { %3260 = vpow2.f32 %v2642_v9  ;;  %v2643_v63 = vmul.f32 -1.442695, %v2184_v0  ;;  %v2186_v24 = vpop.f32.mrb[75].mxu0  ;;  %v2520_v15 = vadd.f32 %v2469_v26, %v4187_v19  ;;  %v2961_v49 = vpop.f32.mrb[62].mxu1 }
 0x80b   :  { %2538 = vst.msk [vmem:[%s4526_s7 + $0x30] sm:$0xff] %vm60_vm0, %v2522_v22  ;;  %v2523_v51 = vadd.f32 %v2961_v49, %v4193_v43  ;;  %v2472_v54 = vpop.f32.mrb[63].mxu1 }
 0x80c   :  { %3262 = vpow2.f32 %v2643_v63  ;;  %2536 = vst.msk [vmem:[%s4526_s7 + $0x20] sm:$0xff] %vm60_vm0, %v2520_v15  ;;  %v2521_v28 = vadd.f32 %v2472_v54, %v4198_v47 }
 0x80d   :  { %2539 = vst.msk [vmem:[%s4526_s7 + $0x38] sm:$0xff] %vm60_vm0, %v2523_v51 }
 0x80e   :  { %2537 = vst.msk [vmem:[%s4526_s7 + $0x28] sm:$0xff] %vm60_vm0, %v2521_v28 }
 0x80f   :  { %v2190_v19 = vpop.f32.mrb[76].mxu0 }
 0x810   :  { %v2644_v43 = vmul.f32 -1.442695, %v2190_v19  ;;  %v2192_v23 = vpop.f32.mrb[77].mxu0 }
 0x811   :  { %v2194_v12 = vpop.f32.mrb[78].mxu0 }
 0x812   :  { %3264 = vpow2.f32 %v2644_v43  ;;  %v2645_v57 = vmul.f32 -1.442695, %v2194_v12  ;;  %v2196_v42 = vpop.f32.mrb[79].mxu0 }
 0x814   :  { %v3261_v36 = vpop.eup %3260  ;;  %3266 = vpow2.f32 %v2645_v57 }
 0x815   :  { %v2275_v47 = vadd.f32 1.0, %v3261_v36 }
 0x816   :  { %v3263_v21 = vpop.eup %3262 }
 0x817   :  { %3268 = vrcp.f32 %v2275_v47  ;;  %v2276_v32 = vadd.f32 1.0, %v3263_v21  ;;  %v2200_v4 = vpop.f32.mrb[80].mxu0 }
 0x818   :  { %v2646_v6 = vmul.f32 -1.442695, %v2200_v4  ;;  %v2202_v59 = vpop.f32.mrb[81].mxu0 }
 0x819   :  { %3270 = vrcp.f32 %v2276_v32  ;;  %v2204_v25 = vpop.f32.mrb[82].mxu0 }
 0x81a   :  { %3272 = vpow2.f32 %v2646_v6  ;;  %v2647_v62 = vmul.f32 -1.442695, %v2204_v25  ;;  %v2206_v34 = vpop.f32.mrb[83].mxu0 }
 0x81c   :  { %v3265_v10 = vpop.eup %3264  ;;  %3274 = vpow2.f32 %v2647_v62 }
 0x81d   :  { %v2277_v56 = vadd.f32 1.0, %v3265_v10 }
 0x81e   :  { %v3267_v5 = vpop.eup %3266 }
 0x81f   :  { %3276 = vrcp.f32 %v2277_v56  ;;  %v2278_v52 = vadd.f32 1.0, %v3267_v5  ;;  %v2210_v55 = vpop.f32.mrb[84].mxu0 }
 0x820   :  { %v2648_v16 = vmul.f32 -1.442695, %v2210_v55  ;;  %v2212_v40 = vpop.f32.mrb[85].mxu0 }
 0x821   :  { %v3269_v58 = vpop.eup %3268  ;;  %3278 = vrcp.f32 %v2278_v52  ;;  %v2214_v38 = vpop.f32.mrb[86].mxu0 }
 0x822   :  { %v2323_v44 = vmul.f32 %v3269_v58, %v2180_v35  ;;  %3280 = vpow2.f32 %v2648_v16  ;;  %v2649_v45 = vmul.f32 -1.442695, %v2214_v38  ;;  %v2216_v61 = vpop.f32.mrb[87].mxu0 }
 0x823   :  { %v3271_v14 = vpop.eup %3270 }
 0x824   :  { %v3273_v2 = vpop.eup %3272  ;;  %v2339_v39 = vmul.f32 %v2323_v44, %v2182_v7  ;;  %v2324_v60 = vmul.f32 %v3271_v14, %v2184_v0  ;;  %3282 = vpow2.f32 %v2649_v45 }
 0x825   :  { %v2279_v37 = vadd.f32 1.0, %v3273_v2 }
 0x826   :  { %v3275_v48 = vpop.eup %3274  ;;  %v2340_v18 = vmul.f32 %v2324_v60, %v2186_v24 }
 0x827   :  { %3284 = vrcp.f32 %v2279_v37  ;;  %v2280_v33 = vadd.f32 1.0, %v3275_v48 }
 0x828   :  { %v2351_v29 = vpack.c.bf16 %v2340_v18, %v2339_v39 }
 0x829   :  { %v3277_v20 = vpop.eup %3276  ;;  %3286 = vrcp.f32 %v2280_v33 }
 0x82a   :  { %v2325_v8 = vmul.f32 %v3277_v20, %v2190_v19  ;;  %2962 = vmatprep.mubr.bf16.mxu1 %v2351_v29 }
 0x82b   :  { %v3279_v53 = vpop.eup %3278 }
 0x82c   :  { %v3281_v31 = vpop.eup %3280  ;;  %v2341_v27 = vmul.f32 %v2325_v8, %v2192_v23  ;;  %v2326_v35 = vmul.f32 %v3279_v53, %v2194_v12 }
 0x82d   :  { %v2281_v9 = vadd.f32 1.0, %v3281_v31 }
 0x82e   :  { %v3283_v41 = vpop.eup %3282  ;;  %v2342_v22 = vmul.f32 %v2326_v35, %v2196_v42 }
 0x82f   :  { %3288 = vrcp.f32 %v2281_v9  ;;  %v2282_v7 = vadd.f32 1.0, %v3283_v41 }
 0x830   :  { %v2352_v0 = vpack.c.bf16 %v2342_v22, %v2341_v27 }
 0x831   :  { %v3285_v26 = vpop.eup %3284  ;;  %3290 = vrcp.f32 %v2282_v7 }
 0x832   :  { %v2327_v63 = vmul.f32 %v3285_v26, %v2200_v4  ;;  %2963 = vmatmul.mubr.bf16.gmra.mrb[64].mxu1 %v2352_v0 }
 0x833   :  { %v3287_v24 = vpop.eup %3286 }
 0x834   :  { %v2343_v15 = vmul.f32 %v2327_v63, %v2202_v59  ;;  %v2328_v49 = vmul.f32 %v3287_v24, %v2204_v25 }
 0x836   :  { %v2344_v51 = vmul.f32 %v2328_v49, %v2206_v34 }
 0x838   :  { %v2353_v54 = vpack.c.bf16 %v2344_v51, %v2343_v15 }
 0x839   :  { %v3289_v28 = vpop.eup %3288 }
 0x83a   :  { %v2329_v19 = vmul.f32 %v3289_v28, %v2210_v55  ;;  %2966 = vmatprep.mubr.bf16.mxu1 %v2353_v54 }
 0x83b   :  { %v3291_v43 = vpop.eup %3290 }
 0x83c   :  { %v2345_v23 = vmul.f32 %v2329_v19, %v2212_v40  ;;  %v2330_v12 = vmul.f32 %v3291_v43, %v2214_v38 }
 0x83e   :  { %v2346_v57 = vmul.f32 %v2330_v12, %v2216_v61 }
 0x840   :  { %v2354_v42 = vpack.c.bf16 %v2346_v57, %v2345_v23 }
 0x842   :  { %2967 = vmatmul.mubr.bf16.gmra.mrb[68].mxu1 %v2354_v42 }
 0x905   :  { %v2964_v36 = vpop.f32.mrb[64].mxu1 }
 0x906   :  { %v2526_v47 = vadd.f32 %v2964_v36, %v4309_v46  ;;  %v2485_v21 = vpop.f32.mrb[65].mxu1 }
 0x907   :  { %v2524_v32 = vadd.f32 %v2485_v21, %v4314_v3  ;;  %v2965_v4 = vpop.f32.mrb[66].mxu1 }
 0x908   :  { %2542 = vst.msk [vmem:[%s4526_s7 + $0x50] sm:$0xff] %vm60_vm0, %v2526_v47  ;;  %v2527_v6 = vadd.f32 %v2965_v4, %v4319_v50  ;;  %v2488_v59 = vpop.f32.mrb[67].mxu1 }
 0x909   :  { %2540 = vst.msk [vmem:[%s4526_s7 + $0x40] sm:$0xff] %vm60_vm0, %v2524_v32  ;;  %v2525_v25 = vadd.f32 %v2488_v59, %v4324_v13 }
 0x90a   :  { %2543 = vst.msk [vmem:[%s4526_s7 + $0x58] sm:$0xff] %vm60_vm0, %v2527_v6 }
 0x90b   :  { %2541 = vst.msk [vmem:[%s4526_s7 + $0x48] sm:$0xff] %vm60_vm0, %v2525_v25 }
 0x915   :  { %v2968_v46 = vpop.f32.mrb[68].mxu1 }
 0x916   :  { %v2530_v3 = vadd.f32 %v2968_v46, %v4345_v1  ;;  %v2501_v50 = vpop.f32.mrb[69].mxu1 }
 0x917   :  { %v2528_v62 = vadd.f32 %v2501_v50, %v4350_v30  ;;  %v2969_v34 = vpop.f32.mrb[70].mxu1 }
 0x918   :  { %2546 = vst.msk [vmem:[%s4526_s7 + $0x70] sm:$0xff] %vm60_vm0, %v2530_v3  ;;  %v2531_v13 = vadd.f32 %v2969_v34, %v4356_v17  ;;  %v2504_v10 = vpop.f32.mrb[71].mxu1 }
 0x919   :  { %2544 = vst.msk [vmem:[%s4526_s7 + $0x60] sm:$0xff] %vm60_vm0, %v2528_v62  ;;  %v2529_v56 = vadd.f32 %v2504_v10, %v4361_v11 }
 0x91a   :  { %2547 = vst.msk [vmem:[%s4526_s7 + $0x78] sm:$0xff] %vm60_vm0, %v2531_v13 }
 0x91b   :  { %2545 = vst.msk [vmem:[%s4526_s7 + $0x68] sm:$0xff] %vm60_vm0, %v2529_v56 }

</bundles_post_ra>
